<compile_context>
chip_gen: v7x
topology: tpu7x:2x2x1
jax: 0.10.0
libtpu: 0.0.40
codegen_flags: <defaults>
</compile_context>

<pallas_src>
import functools

import jax
import jax.numpy as jnp
from jax import lax
from jax.experimental import pallas as pl
from jax.experimental.pallas import tpu as pltpu


# ----------------------------- Pallas kernel -------------------------------

def _birnn_step_kernel(len_ref, gin_ref, whh_ref, y_ref, h_sc, c_sc, *, tt, hidden, nt):
    """Bidirectional LSTM recurrence over one time-chunk.

    Grid: (direction, time-chunk).  direction 0 = forward, 1 = backward.
    Kernel refs (direction dim squeezed away by the BlockSpecs):
      len_ref: (B, 1)      int32 valid lengths
      gin_ref: (TT, B, 4H) precomputed x @ W_ih^T + b, gate order [i|f|o|g]
      whh_ref: (H, 4H)     recurrent weights for this direction
      y_ref:   (TT, B, H)  output hidden states for this direction
      h_sc/c_sc: (B, H) f32 state carried across time-chunks.
    """
    d = pl.program_id(0)          # 0 = fwd, 1 = bwd
    t = pl.program_id(1)          # time-chunk walk counter
    H = hidden

    @pl.when(t == 0)
    def _():
        h_sc[...] = jnp.zeros_like(h_sc)
        c_sc[...] = jnp.zeros_like(c_sc)

    lens = len_ref[...]           # (B, 1) int32
    whh = whh_ref[...]            # (H, 4H) f32
    # Which time-chunk of the sequence this grid step actually loaded.
    tb = (1 - d) * t + d * (nt - 1 - t)
    t_base = tb * tt

    def step(s, carry):
        h, c = carry
        # Local row inside the chunk: fwd walks 0..TT-1, bwd walks TT-1..0.
        r = d * (tt - 1) + (1 - 2 * d) * s
        t_glob = t_base + r
        gates = gin_ref[r].astype(jnp.float32) + jnp.dot(
            h, whh, preferred_element_type=jnp.float32)      # (B, 4H)
        sig = jax.nn.sigmoid(gates[:, :3 * H])                # one EUP pass for i, f, o
        i_g = sig[:, 0:H]
        f_g = sig[:, H:2 * H]
        o_g = sig[:, 2 * H:3 * H]
        g_g = jnp.tanh(gates[:, 3 * H:4 * H])
        c_new = f_g * c + i_g * g_g
        h_new = o_g * jnp.tanh(c_new)
        valid = t_glob < lens                                 # (B, 1) bool
        h = jnp.where(valid, h_new, h)                        # padded step: freeze state
        c = jnp.where(valid, c_new, c)
        # pad_packed_sequence semantics: padded positions emit exactly zero.
        y_ref[r] = jnp.where(valid, h, 0.0).astype(y_ref.dtype)
        return h, c

    h, c = lax.fori_loop(0, tt, step, (h_sc[...], c_sc[...]), unroll=min(tt, 8))
    h_sc[...] = h
    c_sc[...] = c


def _pick_time_chunk(T, B, H, budget_bytes=40 * 1024 * 1024):
    """Largest time-chunk TT (<=128) whose double-buffered blocks fit the VMEM budget
    (sized conservatively so the same TT is portable to v7x's 64 MiB VMEM)."""
    tt = min(T, 128)
    while tt > 8:
        blocks = 2 * (tt * B * 4 * H + tt * B * H) * 4        # gin + y, double-buffered, f32
        fixed = 2 * (H * 4 * H) * 4 + 2 * B * H * 4 + 4 * B   # W_hh (x2 buf) + scratch + lens
        if blocks + fixed <= budget_bytes:
            break
        tt //= 2
    return max(tt, 1)


def _birnn_recurrence(gates_in, whh, lengths, hidden):
    """Fused fwd+bwd LSTM recurrence in one pallas_call.

    gates_in: (2, T, B, 4H) f32 -- precomputed x @ W_ih^T + (b_ih + b_hh)
    whh:      (2, H, 4H)    f32
    lengths:  (B, 1)        int32
    returns   (2, T, B, H)  f32 hidden states (padded steps exactly zero)
    """
    _, T, B, _ = gates_in.shape
    H = hidden
    tt = _pick_time_chunk(T, B, H)
    nt = pl.cdiv(T, tt)
    T_pad = nt * tt
    if T_pad != T:
        # Padded tail steps are automatically invalid (t_glob >= lengths) -> no-ops.
        gates_in = jnp.pad(gates_in, ((0, 0), (0, T_pad - T), (0, 0), (0, 0)))

    def io_map(d, t):
        tb = (1 - d) * t + d * (nt - 1 - t)   # bwd direction walks time in reverse
        return (d, tb, 0, 0)

    kernel = functools.partial(_birnn_step_kernel, tt=tt, hidden=H, nt=nt)
    # TODO(synk): for very large H, single-buffer the W_hh block
    # (pipeline_mode=pl.Buffered(1)) to save VMEM on v7x.
    y = pl.pallas_call(
        kernel,
        out_shape=jax.ShapeDtypeStruct((2, T_pad, B, H), jnp.float32),
        grid_spec=pltpu.PrefetchScalarGridSpec(
            num_scalar_prefetch=0,
            grid=(2, nt),
            in_specs=[
                pl.BlockSpec((B, 1), lambda d, t: (0, 0)),               # lengths
                pl.BlockSpec((None, tt, B, 4 * H), io_map),              # precomputed gates
                pl.BlockSpec((None, H, 4 * H), lambda d, t: (d, 0, 0)),  # W_hh
            ],
            out_specs=pl.BlockSpec((None, tt, B, H), io_map),
            scratch_shapes=[
                pltpu.VMEM((B, H), jnp.float32),   # h
                pltpu.VMEM((B, H), jnp.float32),   # c
            ],
        ),
        compiler_params=pltpu.CompilerParams(
            dimension_semantics=("parallel", "arbitrary"),
            vmem_limit_bytes=48 * 1024 * 1024,
        ),
    )(lengths, gates_in, whh)
    return y[:, :T]


# ----------------------------- Module wrapper -------------------------------

class StackedBRNNPallas:
    """Stacked bidirectional LSTM = PyTorch StackedBRNN forward (padded path,
    dropout=0 / eval semantics)."""

    def __init__(self, input_size, hidden_size, num_layers, concat_layers=False,
                 key=jax.random.PRNGKey(0)):
        self.hidden_size = hidden_size
        self.num_layers = num_layers
        self.concat_layers = concat_layers
        self.params = []  # per layer: (wih (2,Din,4H), whh (2,H,4H), b (2,4H))

        bound = 1.0 / (hidden_size ** 0.5)
        H = hidden_size
        for i in range(num_layers):
            d_in = input_size if i == 0 else 2 * hidden_size
            wih_dirs, whh_dirs, b_dirs = [], [], []
            for _ in range(2):  # fwd, bwd
                key, k1, k2, k3, k4 = jax.random.split(key, 5)
                # Gate columns ordered [i | f | o | g] (see kernel).
                w_ih = jax.random.uniform(k1, (d_in, 4 * H), jnp.float32, -bound, bound)
                w_hh = jax.random.uniform(k2, (H, 4 * H), jnp.float32, -bound, bound)
                b_ih = jax.random.uniform(k3, (4 * H,), jnp.float32, -bound, bound)
                b_hh = jax.random.uniform(k4, (4 * H,), jnp.float32, -bound, bound)
                wih_dirs.append(w_ih)
                whh_dirs.append(w_hh)
                b_dirs.append(b_ih + b_hh)
            self.params.append(
                (jnp.stack(wih_dirs), jnp.stack(whh_dirs), jnp.stack(b_dirs)))

    def __call__(self, x, x_mask):
        # x: (B, T, D) f32 ; x_mask: (B, T) with 1 for padding, 0 for true tokens.
        B, T, _ = x.shape
        H = self.hidden_size
        lengths = jnp.sum((x_mask == 0).astype(jnp.int32), axis=1).reshape(B, 1)

        layer_inp = None    # time-major (T, B, 2H) after the first layer
        layer_outs = []
        for li, (wih, whh, b) in enumerate(self.params):
            # Hoisted input projection: one dense GEMM over all T*B rows for both
            # directions (fills the MXU); bias folded in; first layer also folds
            # the (B,T,D)->(T,B,D) layout change into the einsum.
            # NOTE: on v6e/v7x the einsum operands could be cast to bf16 for the
            # MXU; kept f32 here to match the f32 reference exactly.
            if li == 0:
                gin = jnp.einsum("btd,edh->etbh", x, wih,
                                 preferred_element_type=jnp.float32)
            else:
                gin = jnp.einsum("tbi,eih->etbh", layer_inp, wih,
                                 preferred_element_type=jnp.float32)
            gin = gin + b[:, None, None, :]

            y = _birnn_recurrence(gin, whh, lengths, H)       # (2, T, B, H)
            out = jnp.concatenate([y[0], y[1]], axis=-1)      # (T, B, 2H)
            layer_outs.append(out)
            layer_inp = out

        output = (jnp.concatenate(layer_outs, axis=-1)
                  if self.concat_layers else layer_outs[-1])
        return jnp.transpose(output, (1, 0, 2))               # (B, T, hdim_encoded)


# ----------------------------- Pure-JAX reference ---------------------------

def _ref_lstm_direction(gin_tbg, lengths, whh, hidden, reverse):
    T, B, _ = gin_tbg.shape
    H = hidden
    t_idx = jnp.arange(T)
    if reverse:
        gin_tbg = gin_tbg[::-1]
        t_idx = t_idx[::-1]

    def step(carry, inp):
        h, c = carry
        g_in, t = inp
        gates = g_in + h @ whh
        sig = jax.nn.sigmoid(gates[:, :3 * H])
        i_g, f_g, o_g = sig[:, :H], sig[:, H:2 * H], sig[:, 2 * H:3 * H]
        g_g = jnp.tanh(gates[:, 3 * H:])
        c_new = f_g * c + i_g * g_g
        h_new = o_g * jnp.tanh(c_new)
        valid = t < lengths                       # (B, 1)
        h = jnp.where(valid, h_new, h)
        c = jnp.where(valid, c_new, c)
        return (h, c), jnp.where(valid, h, 0.0)

    init = (jnp.zeros((B, H), jnp.float32), jnp.zeros((B, H), jnp.float32))
    _, ys = jax.lax.scan(step, init, (gin_tbg, t_idx))
    return ys[::-1] if reverse else ys


def _reference_forward(model, x, x_mask):
    B, T, _ = x.shape
    H = model.hidden_size
    lengths = jnp.sum((x_mask == 0).astype(jnp.int32), axis=1).reshape(B, 1)
    layer_inp = None
    layer_outs = []
    for li, (wih, whh, b) in enumerate(model.params):
        if li == 0:
            gin = jnp.einsum("btd,edh->etbh", x, wih) + b[:, None, None, :]
        else:
            gin = jnp.einsum("tbi,eih->etbh", layer_inp, wih) + b[:, None, None, :]
        yf = _ref_lstm_direction(gin[0], lengths, whh[0], H, reverse=False)
        yb = _ref_lstm_direction(gin[1], lengths, whh[1], H, reverse=True)
        out = jnp.concatenate([yf, yb], axis=-1)
        layer_outs.append(out)
        layer_inp = out
    output = (jnp.concatenate(layer_outs, axis=-1)
              if model.concat_layers else layer_outs[-1])
    return jnp.transpose(output, (1, 0, 2))


# ----------------------------------- main -----------------------------------

if __name__ == "__main__":
    B, T, D, H, L = 2, 8, 16, 32, 2

    key = jax.random.PRNGKey(0)
    kx, kp = jax.random.split(key)
    x = jax.random.normal(kx, (B, T, D), dtype=jnp.float32)

    # x_mask: 1 for padding, 0 for true tokens. lengths = [8, 5]
    lens = jnp.array([8, 5], dtype=jnp.int32)
    x_mask = (jnp.arange(T)[None, :] >= lens[:, None]).astype(jnp.int32)

    model = StackedBRNNPallas(input_size=D, hidden_size=H, num_layers=L,
                              concat_layers=False, key=kp)
    out = jax.block_until_ready(model(x, x_mask))
    ref = _reference_forward(model, x, x_mask)

    assert out.shape == (B, T, 2 * H), out.shape
    assert jnp.allclose(out, ref, rtol=1e-4, atol=1e-4), "mismatch vs pure-JAX reference"
    # padded positions must be exactly zero (pad_packed_sequence semantics)
    assert float(jnp.abs(out[1, 5:]).max()) == 0.0

    # concat_layers=True path (output = num_layers * 2H)
    model_c = StackedBRNNPallas(input_size=D, hidden_size=H, num_layers=L,
                                concat_layers=True, key=kp)
    out_c = jax.block_until_ready(model_c(x, x_mask))
    ref_c = _reference_forward(model_c, x, x_mask)
    assert out_c.shape == (B, T, 2 * H * L), out_c.shape
    assert jnp.allclose(out_c, ref_c, rtol=1e-4, atol=1e-4), "concat mismatch vs reference"

    # TODO(synk): inter-layer dropout (dropout_rate > 0 in training mode) is not
    # implemented; module defaults (dropout=0 / eval) give identical semantics.
    print("KERNEL_OK")
</pallas_src>

<mosaic_0001>
module attributes {stable_mosaic.version = 11 : i64} {
  func.func @_birnn_step_kernel(%arg0: i32, %arg1: i32, %arg2: memref<2x1xi32, #tpu.memory_space<vmem>>, %arg3: memref<1x8x2x128xf32, #tpu.memory_space<vmem>>, %arg4: memref<1x32x128xf32, #tpu.memory_space<vmem>>, %arg5: memref<1x8x2x32xf32, #tpu.memory_space<vmem>>, %arg6: memref<2x32xf32, #tpu.memory_space<vmem>>, %arg7: memref<2x32xf32, #tpu.memory_space<vmem>>) attributes {dimension_semantics = [#tpu.dimension_semantics<parallel>, #tpu.dimension_semantics<arbitrary>], iteration_bounds = array<i64: 2, 1>, scalar_prefetch = 0 : i64, scratch_operands = 2 : i64, tpu.core_type = #tpu.core_type<tc>, window_params = [{pipeline_mode = #tpu.pipeline_mode<synchronous>, transform_indices = @transform_0, window_bounds = array<i64: 2, 1>}, {transform_indices = @transform_1, window_bounds = array<i64: 1, 8, 2, 128>}, {transform_indices = @transform_2, window_bounds = array<i64: 1, 32, 128>}, {transform_indices = @transform_3, window_bounds = array<i64: 1, 8, 2, 32>}]} {
    %c0_i32 = arith.constant 0 : i32
    %0 = arith.cmpi eq, %arg1, %c0_i32 : i32
    %1 = arith.extui %0 : i1 to i32
    %c0_i32_0 = arith.constant 0 : i32
    %2 = arith.cmpi ne, %1, %c0_i32_0 : i32
    scf.if %2 {
      %cst_112 = arith.constant 0.000000e+00 : f32
      %360 = vector.broadcast %cst_112 : f32 to vector<2x32xf32>
      %c0_113 = arith.constant 0 : index
      %c0_114 = arith.constant 0 : index
      %361 = vector.load %arg6[%c0_113, %c0_114] : memref<2x32xf32, #tpu.memory_space<vmem>>, vector<2x32xf32>
      tpu.vector_store %arg6[%c0_113, %c0_114], %360 {strides = array<i32>} : memref<2x32xf32, #tpu.memory_space<vmem>>, vector<2x32xf32>,
      %cst_115 = arith.constant 0.000000e+00 : f32
      %362 = vector.broadcast %cst_115 : f32 to vector<2x32xf32>
      %c0_116 = arith.constant 0 : index
      %c0_117 = arith.constant 0 : index
      %363 = vector.load %arg7[%c0_116, %c0_117] : memref<2x32xf32, #tpu.memory_space<vmem>>, vector<2x32xf32>
      tpu.vector_store %arg7[%c0_116, %c0_117], %362 {strides = array<i32>} : memref<2x32xf32, #tpu.memory_space<vmem>>, vector<2x32xf32>,
    } else {
    }
    %c0 = arith.constant 0 : index
    %c0_1 = arith.constant 0 : index
    %3 = vector.load %arg2[%c0, %c0_1] : memref<2x1xi32, #tpu.memory_space<vmem>>, vector<2x1xi32>
    %c0_2 = arith.constant 0 : index
    %c0_3 = arith.constant 0 : index
    %c0_4 = arith.constant 0 : index
    %4 = vector.load %arg4[%c0_2, %c0_3, %c0_4] : memref<1x32x128xf32, #tpu.memory_space<vmem>>, vector<1x32x128xf32>
    %5 = vector.shape_cast %4 : vector<1x32x128xf32> to vector<32x128xf32>
    %c1_i32 = arith.constant 1 : i32
    %6 = arith.subi %c1_i32, %arg0 : i32
    %7 = arith.muli %6, %arg1 : i32
    %c0_i32_5 = arith.constant 0 : i32
    %8 = arith.subi %c0_i32_5, %arg1 : i32
    %9 = arith.muli %arg0, %8 : i32
    %10 = arith.addi %7, %9 : i32
    %c8_i32 = arith.constant 8 : i32
    %11 = arith.muli %10, %c8_i32 : i32
    %c0_6 = arith.constant 0 : index
    %c0_7 = arith.constant 0 : index
    %12 = vector.load %arg6[%c0_6, %c0_7] : memref<2x32xf32, #tpu.memory_space<vmem>>, vector<2x32xf32>
    %c0_8 = arith.constant 0 : index
    %c0_9 = arith.constant 0 : index
    %13 = vector.load %arg7[%c0_8, %c0_9] : memref<2x32xf32, #tpu.memory_space<vmem>>, vector<2x32xf32>
    %c0_i32_10 = arith.constant 0 : i32
    %c7_i32 = arith.constant 7 : i32
    %14 = arith.muli %arg0, %c7_i32 : i32
    %c2_i32 = arith.constant 2 : i32
    %15 = arith.muli %c2_i32, %arg0 : i32
    %c1_i32_11 = arith.constant 1 : i32
    %16 = arith.subi %c1_i32_11, %15 : i32
    %17 = arith.muli %16, %c0_i32_10 : i32
    %18 = arith.addi %14, %17 : i32
    %19 = arith.addi %11, %18 : i32
    %c0_12 = arith.constant 0 : index
    %20 = arith.index_cast %18 : i32 to index
    %c0_13 = arith.constant 0 : index
    %c0_14 = arith.constant 0 : index
    %21 = vector.load %arg3[%c0_12, %20, %c0_13, %c0_14] : memref<1x8x2x128xf32, #tpu.memory_space<vmem>>, vector<1x1x2x128xf32>
    %22 = vector.shape_cast %21 : vector<1x1x2x128xf32> to vector<2x128xf32>
    %cst = arith.constant dense<0.000000e+00> : vector<2x128xf32>
    %23 = tpu.matmul %12, %5, %cst {dimension_numbers = #tpu.dot_dimension_numbers<[1], [0], [0], [1], [0, 0, 1, 1], [], []>} : vector<2x32xf32>, vector<32x128xf32>, vector<2x128xf32> -> vector<2x128xf32>
    %24 = arith.addf %22, %23 : vector<2x128xf32>
    %25 = vector.extract_strided_slice %24 {offsets = [0, 0], sizes = [2, 96], strides = [1, 1]} : vector<2x128xf32> to vector<2x96xf32>
    %26 = arith.negf %25 : vector<2x96xf32>
    %27 = math.exp %26 : vector<2x96xf32>
    %cst_15 = arith.constant 1.000000e+00 : f32
    %28 = vector.broadcast %cst_15 : f32 to vector<2x96xf32>
    %29 = arith.addf %28, %27 : vector<2x96xf32>
    %30 = arith.divf %28, %29 : vector<2x96xf32>
    %31 = vector.extract_strided_slice %30 {offsets = [0, 0], sizes = [2, 32], strides = [1, 1]} : vector<2x96xf32> to vector<2x32xf32>
    %32 = vector.extract_strided_slice %30 {offsets = [0, 32], sizes = [2, 32], strides = [1, 1]} : vector<2x96xf32> to vector<2x32xf32>
    %33 = vector.extract_strided_slice %30 {offsets = [0, 64], sizes = [2, 32], strides = [1, 1]} : vector<2x96xf32> to vector<2x32xf32>
    %34 = vector.extract_strided_slice %24 {offsets = [0, 96], sizes = [2, 32], strides = [1, 1]} : vector<2x128xf32> to vector<2x32xf32>
    %35 = math.tanh %34 : vector<2x32xf32>
    %36 = arith.mulf %32, %13 : vector<2x32xf32>
    %37 = arith.mulf %31, %35 : vector<2x32xf32>
    %38 = arith.addf %36, %37 : vector<2x32xf32>
    %39 = math.tanh %38 : vector<2x32xf32>
    %40 = arith.mulf %33, %39 : vector<2x32xf32>
    %41 = vector.broadcast %19 : i32 to vector<2x1xi32>
    %42 = arith.cmpi slt, %41, %3 : vector<2x1xi32>
    %43 = vector.shape_cast %42 : vector<2x1xi1> to vector<2x1xi1>
    %44 = vector.broadcast %43 : vector<2x1xi1> to vector<2x32xi1>
    %45 = arith.select %44, %40, %12 : vector<2x32xi1>, vector<2x32xf32>
    %46 = vector.shape_cast %42 : vector<2x1xi1> to vector<2x1xi1>
    %47 = vector.broadcast %46 : vector<2x1xi1> to vector<2x32xi1>
    %48 = arith.select %47, %38, %13 : vector<2x32xi1>, vector<2x32xf32>
    %cst_16 = arith.constant 0.000000e+00 : f32
    %49 = vector.shape_cast %42 : vector<2x1xi1> to vector<2x1xi1>
    %50 = vector.broadcast %49 : vector<2x1xi1> to vector<2x32xi1>
    %51 = vector.broadcast %cst_16 : f32 to vector<2x32xf32>
    %52 = arith.select %50, %45, %51 : vector<2x32xi1>, vector<2x32xf32>
    %c0_17 = arith.constant 0 : index
    %53 = arith.index_cast %18 : i32 to index
    %c0_18 = arith.constant 0 : index
    %c0_19 = arith.constant 0 : index
    %54 = vector.load %arg5[%c0_17, %53, %c0_18, %c0_19] : memref<1x8x2x32xf32, #tpu.memory_space<vmem>>, vector<1x1x2x32xf32>
    %55 = vector.shape_cast %54 : vector<1x1x2x32xf32> to vector<2x32xf32>
    %56 = vector.shape_cast %52 : vector<2x32xf32> to vector<1x1x2x32xf32>
    tpu.vector_store %arg5[%c0_17, %53, %c0_18, %c0_19], %56 {strides = array<i32>} : memref<1x8x2x32xf32, #tpu.memory_space<vmem>>, vector<1x1x2x32xf32>,
    %c1_i32_20 = arith.constant 1 : i32
    %c7_i32_21 = arith.constant 7 : i32
    %57 = arith.muli %arg0, %c7_i32_21 : i32
    %c2_i32_22 = arith.constant 2 : i32
    %58 = arith.muli %c2_i32_22, %arg0 : i32
    %c1_i32_23 = arith.constant 1 : i32
    %59 = arith.subi %c1_i32_23, %58 : i32
    %60 = arith.muli %59, %c1_i32_20 : i32
    %61 = arith.addi %57, %60 : i32
    %62 = arith.addi %11, %61 : i32
    %c0_24 = arith.constant 0 : index
    %63 = arith.index_cast %61 : i32 to index
    %c0_25 = arith.constant 0 : index
    %c0_26 = arith.constant 0 : index
    %64 = vector.load %arg3[%c0_24, %63, %c0_25, %c0_26] : memref<1x8x2x128xf32, #tpu.memory_space<vmem>>, vector<1x1x2x128xf32>
    %65 = vector.shape_cast %64 : vector<1x1x2x128xf32> to vector<2x128xf32>
    %cst_27 = arith.constant dense<0.000000e+00> : vector<2x128xf32>
    %66 = tpu.matmul %45, %5, %cst_27 {dimension_numbers = #tpu.dot_dimension_numbers<[1], [0], [0], [1], [0, 0, 1, 1], [], []>} : vector<2x32xf32>, vector<32x128xf32>, vector<2x128xf32> -> vector<2x128xf32>
    %67 = arith.addf %65, %66 : vector<2x128xf32>
    %68 = vector.extract_strided_slice %67 {offsets = [0, 0], sizes = [2, 96], strides = [1, 1]} : vector<2x128xf32> to vector<2x96xf32>
    %69 = arith.negf %68 : vector<2x96xf32>
    %70 = math.exp %69 : vector<2x96xf32>
    %cst_28 = arith.constant 1.000000e+00 : f32
    %71 = vector.broadcast %cst_28 : f32 to vector<2x96xf32>
    %72 = arith.addf %71, %70 : vector<2x96xf32>
    %73 = arith.divf %71, %72 : vector<2x96xf32>
    %74 = vector.extract_strided_slice %73 {offsets = [0, 0], sizes = [2, 32], strides = [1, 1]} : vector<2x96xf32> to vector<2x32xf32>
    %75 = vector.extract_strided_slice %73 {offsets = [0, 32], sizes = [2, 32], strides = [1, 1]} : vector<2x96xf32> to vector<2x32xf32>
    %76 = vector.extract_strided_slice %73 {offsets = [0, 64], sizes = [2, 32], strides = [1, 1]} : vector<2x96xf32> to vector<2x32xf32>
    %77 = vector.extract_strided_slice %67 {offsets = [0, 96], sizes = [2, 32], strides = [1, 1]} : vector<2x128xf32> to vector<2x32xf32>
    %78 = math.tanh %77 : vector<2x32xf32>
    %79 = arith.mulf %75, %48 : vector<2x32xf32>
    %80 = arith.mulf %74, %78 : vector<2x32xf32>
    %81 = arith.addf %79, %80 : vector<2x32xf32>
    %82 = math.tanh %81 : vector<2x32xf32>
    %83 = arith.mulf %76, %82 : vector<2x32xf32>
    %84 = vector.broadcast %62 : i32 to vector<2x1xi32>
    %85 = arith.cmpi slt, %84, %3 : vector<2x1xi32>
    %86 = vector.shape_cast %85 : vector<2x1xi1> to vector<2x1xi1>
    %87 = vector.broadcast %86 : vector<2x1xi1> to vector<2x32xi1>
    %88 = arith.select %87, %83, %45 : vector<2x32xi1>, vector<2x32xf32>
    %89 = vector.shape_cast %85 : vector<2x1xi1> to vector<2x1xi1>
    %90 = vector.broadcast %89 : vector<2x1xi1> to vector<2x32xi1>
    %91 = arith.select %90, %81, %48 : vector<2x32xi1>, vector<2x32xf32>
    %cst_29 = arith.constant 0.000000e+00 : f32
    %92 = vector.shape_cast %85 : vector<2x1xi1> to vector<2x1xi1>
    %93 = vector.broadcast %92 : vector<2x1xi1> to vector<2x32xi1>
    %94 = vector.broadcast %cst_29 : f32 to vector<2x32xf32>
    %95 = arith.select %93, %88, %94 : vector<2x32xi1>, vector<2x32xf32>
    %c0_30 = arith.constant 0 : index
    %96 = arith.index_cast %61 : i32 to index
    %c0_31 = arith.constant 0 : index
    %c0_32 = arith.constant 0 : index
    %97 = vector.load %arg5[%c0_30, %96, %c0_31, %c0_32] : memref<1x8x2x32xf32, #tpu.memory_space<vmem>>, vector<1x1x2x32xf32>
    %98 = vector.shape_cast %97 : vector<1x1x2x32xf32> to vector<2x32xf32>
    %99 = vector.shape_cast %95 : vector<2x32xf32> to vector<1x1x2x32xf32>
    tpu.vector_store %arg5[%c0_30, %96, %c0_31, %c0_32], %99 {strides = array<i32>} : memref<1x8x2x32xf32, #tpu.memory_space<vmem>>, vector<1x1x2x32xf32>,
    %c2_i32_33 = arith.constant 2 : i32
    %c7_i32_34 = arith.constant 7 : i32
    %100 = arith.muli %arg0, %c7_i32_34 : i32
    %c2_i32_35 = arith.constant 2 : i32
    %101 = arith.muli %c2_i32_35, %arg0 : i32
    %c1_i32_36 = arith.constant 1 : i32
    %102 = arith.subi %c1_i32_36, %101 : i32
    %103 = arith.muli %102, %c2_i32_33 : i32
    %104 = arith.addi %100, %103 : i32
    %105 = arith.addi %11, %104 : i32
    %c0_37 = arith.constant 0 : index
    %106 = arith.index_cast %104 : i32 to index
    %c0_38 = arith.constant 0 : index
    %c0_39 = arith.constant 0 : index
    %107 = vector.load %arg3[%c0_37, %106, %c0_38, %c0_39] : memref<1x8x2x128xf32, #tpu.memory_space<vmem>>, vector<1x1x2x128xf32>
    %108 = vector.shape_cast %107 : vector<1x1x2x128xf32> to vector<2x128xf32>
    %cst_40 = arith.constant dense<0.000000e+00> : vector<2x128xf32>
    %109 = tpu.matmul %88, %5, %cst_40 {dimension_numbers = #tpu.dot_dimension_numbers<[1], [0], [0], [1], [0, 0, 1, 1], [], []>} : vector<2x32xf32>, vector<32x128xf32>, vector<2x128xf32> -> vector<2x128xf32>
    %110 = arith.addf %108, %109 : vector<2x128xf32>
    %111 = vector.extract_strided_slice %110 {offsets = [0, 0], sizes = [2, 96], strides = [1, 1]} : vector<2x128xf32> to vector<2x96xf32>
    %112 = arith.negf %111 : vector<2x96xf32>
    %113 = math.exp %112 : vector<2x96xf32>
    %cst_41 = arith.constant 1.000000e+00 : f32
    %114 = vector.broadcast %cst_41 : f32 to vector<2x96xf32>
    %115 = arith.addf %114, %113 : vector<2x96xf32>
    %116 = arith.divf %114, %115 : vector<2x96xf32>
    %117 = vector.extract_strided_slice %116 {offsets = [0, 0], sizes = [2, 32], strides = [1, 1]} : vector<2x96xf32> to vector<2x32xf32>
    %118 = vector.extract_strided_slice %116 {offsets = [0, 32], sizes = [2, 32], strides = [1, 1]} : vector<2x96xf32> to vector<2x32xf32>
    %119 = vector.extract_strided_slice %116 {offsets = [0, 64], sizes = [2, 32], strides = [1, 1]} : vector<2x96xf32> to vector<2x32xf32>
    %120 = vector.extract_strided_slice %110 {offsets = [0, 96], sizes = [2, 32], strides = [1, 1]} : vector<2x128xf32> to vector<2x32xf32>
    %121 = math.tanh %120 : vector<2x32xf32>
    %122 = arith.mulf %118, %91 : vector<2x32xf32>
    %123 = arith.mulf %117, %121 : vector<2x32xf32>
    %124 = arith.addf %122, %123 : vector<2x32xf32>
    %125 = math.tanh %124 : vector<2x32xf32>
    %126 = arith.mulf %119, %125 : vector<2x32xf32>
    %127 = vector.broadcast %105 : i32 to vector<2x1xi32>
    %128 = arith.cmpi slt, %127, %3 : vector<2x1xi32>
    %129 = vector.shape_cast %128 : vector<2x1xi1> to vector<2x1xi1>
    %130 = vector.broadcast %129 : vector<2x1xi1> to vector<2x32xi1>
    %131 = arith.select %130, %126, %88 : vector<2x32xi1>, vector<2x32xf32>
    %132 = vector.shape_cast %128 : vector<2x1xi1> to vector<2x1xi1>
    %133 = vector.broadcast %132 : vector<2x1xi1> to vector<2x32xi1>
    %134 = arith.select %133, %124, %91 : vector<2x32xi1>, vector<2x32xf32>
    %cst_42 = arith.constant 0.000000e+00 : f32
    %135 = vector.shape_cast %128 : vector<2x1xi1> to vector<2x1xi1>
    %136 = vector.broadcast %135 : vector<2x1xi1> to vector<2x32xi1>
    %137 = vector.broadcast %cst_42 : f32 to vector<2x32xf32>
    %138 = arith.select %136, %131, %137 : vector<2x32xi1>, vector<2x32xf32>
    %c0_43 = arith.constant 0 : index
    %139 = arith.index_cast %104 : i32 to index
    %c0_44 = arith.constant 0 : index
    %c0_45 = arith.constant 0 : index
    %140 = vector.load %arg5[%c0_43, %139, %c0_44, %c0_45] : memref<1x8x2x32xf32, #tpu.memory_space<vmem>>, vector<1x1x2x32xf32>
    %141 = vector.shape_cast %140 : vector<1x1x2x32xf32> to vector<2x32xf32>
    %142 = vector.shape_cast %138 : vector<2x32xf32> to vector<1x1x2x32xf32>
    tpu.vector_store %arg5[%c0_43, %139, %c0_44, %c0_45], %142 {strides = array<i32>} : memref<1x8x2x32xf32, #tpu.memory_space<vmem>>, vector<1x1x2x32xf32>,
    %c3_i32 = arith.constant 3 : i32
    %c7_i32_46 = arith.constant 7 : i32
    %143 = arith.muli %arg0, %c7_i32_46 : i32
    %c2_i32_47 = arith.constant 2 : i32
    %144 = arith.muli %c2_i32_47, %arg0 : i32
    %c1_i32_48 = arith.constant 1 : i32
    %145 = arith.subi %c1_i32_48, %144 : i32
    %146 = arith.muli %145, %c3_i32 : i32
    %147 = arith.addi %143, %146 : i32
    %148 = arith.addi %11, %147 : i32
    %c0_49 = arith.constant 0 : index
    %149 = arith.index_cast %147 : i32 to index
    %c0_50 = arith.constant 0 : index
    %c0_51 = arith.constant 0 : index
    %150 = vector.load %arg3[%c0_49, %149, %c0_50, %c0_51] : memref<1x8x2x128xf32, #tpu.memory_space<vmem>>, vector<1x1x2x128xf32>
    %151 = vector.shape_cast %150 : vector<1x1x2x128xf32> to vector<2x128xf32>
    %cst_52 = arith.constant dense<0.000000e+00> : vector<2x128xf32>
    %152 = tpu.matmul %131, %5, %cst_52 {dimension_numbers = #tpu.dot_dimension_numbers<[1], [0], [0], [1], [0, 0, 1, 1], [], []>} : vector<2x32xf32>, vector<32x128xf32>, vector<2x128xf32> -> vector<2x128xf32>
    %153 = arith.addf %151, %152 : vector<2x128xf32>
    %154 = vector.extract_strided_slice %153 {offsets = [0, 0], sizes = [2, 96], strides = [1, 1]} : vector<2x128xf32> to vector<2x96xf32>
    %155 = arith.negf %154 : vector<2x96xf32>
    %156 = math.exp %155 : vector<2x96xf32>
    %cst_53 = arith.constant 1.000000e+00 : f32
    %157 = vector.broadcast %cst_53 : f32 to vector<2x96xf32>
    %158 = arith.addf %157, %156 : vector<2x96xf32>
    %159 = arith.divf %157, %158 : vector<2x96xf32>
    %160 = vector.extract_strided_slice %159 {offsets = [0, 0], sizes = [2, 32], strides = [1, 1]} : vector<2x96xf32> to vector<2x32xf32>
    %161 = vector.extract_strided_slice %159 {offsets = [0, 32], sizes = [2, 32], strides = [1, 1]} : vector<2x96xf32> to vector<2x32xf32>
    %162 = vector.extract_strided_slice %159 {offsets = [0, 64], sizes = [2, 32], strides = [1, 1]} : vector<2x96xf32> to vector<2x32xf32>
    %163 = vector.extract_strided_slice %153 {offsets = [0, 96], sizes = [2, 32], strides = [1, 1]} : vector<2x128xf32> to vector<2x32xf32>
    %164 = math.tanh %163 : vector<2x32xf32>
    %165 = arith.mulf %161, %134 : vector<2x32xf32>
    %166 = arith.mulf %160, %164 : vector<2x32xf32>
    %167 = arith.addf %165, %166 : vector<2x32xf32>
    %168 = math.tanh %167 : vector<2x32xf32>
    %169 = arith.mulf %162, %168 : vector<2x32xf32>
    %170 = vector.broadcast %148 : i32 to vector<2x1xi32>
    %171 = arith.cmpi slt, %170, %3 : vector<2x1xi32>
    %172 = vector.shape_cast %171 : vector<2x1xi1> to vector<2x1xi1>
    %173 = vector.broadcast %172 : vector<2x1xi1> to vector<2x32xi1>
    %174 = arith.select %173, %169, %131 : vector<2x32xi1>, vector<2x32xf32>
    %175 = vector.shape_cast %171 : vector<2x1xi1> to vector<2x1xi1>
    %176 = vector.broadcast %175 : vector<2x1xi1> to vector<2x32xi1>
    %177 = arith.select %176, %167, %134 : vector<2x32xi1>, vector<2x32xf32>
    %cst_54 = arith.constant 0.000000e+00 : f32
    %178 = vector.shape_cast %171 : vector<2x1xi1> to vector<2x1xi1>
    %179 = vector.broadcast %178 : vector<2x1xi1> to vector<2x32xi1>
    %180 = vector.broadcast %cst_54 : f32 to vector<2x32xf32>
    %181 = arith.select %179, %174, %180 : vector<2x32xi1>, vector<2x32xf32>
    %c0_55 = arith.constant 0 : index
    %182 = arith.index_cast %147 : i32 to index
    %c0_56 = arith.constant 0 : index
    %c0_57 = arith.constant 0 : index
    %183 = vector.load %arg5[%c0_55, %182, %c0_56, %c0_57] : memref<1x8x2x32xf32, #tpu.memory_space<vmem>>, vector<1x1x2x32xf32>
    %184 = vector.shape_cast %183 : vector<1x1x2x32xf32> to vector<2x32xf32>
    %185 = vector.shape_cast %181 : vector<2x32xf32> to vector<1x1x2x32xf32>
    tpu.vector_store %arg5[%c0_55, %182, %c0_56, %c0_57], %185 {strides = array<i32>} : memref<1x8x2x32xf32, #tpu.memory_space<vmem>>, vector<1x1x2x32xf32>,
    %c4_i32 = arith.constant 4 : i32
    %c7_i32_58 = arith.constant 7 : i32
    %186 = arith.muli %arg0, %c7_i32_58 : i32
    %c2_i32_59 = arith.constant 2 : i32
    %187 = arith.muli %c2_i32_59, %arg0 : i32
    %c1_i32_60 = arith.constant 1 : i32
    %188 = arith.subi %c1_i32_60, %187 : i32
    %189 = arith.muli %188, %c4_i32 : i32
    %190 = arith.addi %186, %189 : i32
    %191 = arith.addi %11, %190 : i32
    %c0_61 = arith.constant 0 : index
    %192 = arith.index_cast %190 : i32 to index
    %c0_62 = arith.constant 0 : index
    %c0_63 = arith.constant 0 : index
    %193 = vector.load %arg3[%c0_61, %192, %c0_62, %c0_63] : memref<1x8x2x128xf32, #tpu.memory_space<vmem>>, vector<1x1x2x128xf32>
    %194 = vector.shape_cast %193 : vector<1x1x2x128xf32> to vector<2x128xf32>
    %cst_64 = arith.constant dense<0.000000e+00> : vector<2x128xf32>
    %195 = tpu.matmul %174, %5, %cst_64 {dimension_numbers = #tpu.dot_dimension_numbers<[1], [0], [0], [1], [0, 0, 1, 1], [], []>} : vector<2x32xf32>, vector<32x128xf32>, vector<2x128xf32> -> vector<2x128xf32>
    %196 = arith.addf %194, %195 : vector<2x128xf32>
    %197 = vector.extract_strided_slice %196 {offsets = [0, 0], sizes = [2, 96], strides = [1, 1]} : vector<2x128xf32> to vector<2x96xf32>
    %198 = arith.negf %197 : vector<2x96xf32>
    %199 = math.exp %198 : vector<2x96xf32>
    %cst_65 = arith.constant 1.000000e+00 : f32
    %200 = vector.broadcast %cst_65 : f32 to vector<2x96xf32>
    %201 = arith.addf %200, %199 : vector<2x96xf32>
    %202 = arith.divf %200, %201 : vector<2x96xf32>
    %203 = vector.extract_strided_slice %202 {offsets = [0, 0], sizes = [2, 32], strides = [1, 1]} : vector<2x96xf32> to vector<2x32xf32>
    %204 = vector.extract_strided_slice %202 {offsets = [0, 32], sizes = [2, 32], strides = [1, 1]} : vector<2x96xf32> to vector<2x32xf32>
    %205 = vector.extract_strided_slice %202 {offsets = [0, 64], sizes = [2, 32], strides = [1, 1]} : vector<2x96xf32> to vector<2x32xf32>
    %206 = vector.extract_strided_slice %196 {offsets = [0, 96], sizes = [2, 32], strides = [1, 1]} : vector<2x128xf32> to vector<2x32xf32>
    %207 = math.tanh %206 : vector<2x32xf32>
    %208 = arith.mulf %204, %177 : vector<2x32xf32>
    %209 = arith.mulf %203, %207 : vector<2x32xf32>
    %210 = arith.addf %208, %209 : vector<2x32xf32>
    %211 = math.tanh %210 : vector<2x32xf32>
    %212 = arith.mulf %205, %211 : vector<2x32xf32>
    %213 = vector.broadcast %191 : i32 to vector<2x1xi32>
    %214 = arith.cmpi slt, %213, %3 : vector<2x1xi32>
    %215 = vector.shape_cast %214 : vector<2x1xi1> to vector<2x1xi1>
    %216 = vector.broadcast %215 : vector<2x1xi1> to vector<2x32xi1>
    %217 = arith.select %216, %212, %174 : vector<2x32xi1>, vector<2x32xf32>
    %218 = vector.shape_cast %214 : vector<2x1xi1> to vector<2x1xi1>
    %219 = vector.broadcast %218 : vector<2x1xi1> to vector<2x32xi1>
    %220 = arith.select %219, %210, %177 : vector<2x32xi1>, vector<2x32xf32>
    %cst_66 = arith.constant 0.000000e+00 : f32
    %221 = vector.shape_cast %214 : vector<2x1xi1> to vector<2x1xi1>
    %222 = vector.broadcast %221 : vector<2x1xi1> to vector<2x32xi1>
    %223 = vector.broadcast %cst_66 : f32 to vector<2x32xf32>
    %224 = arith.select %222, %217, %223 : vector<2x32xi1>, vector<2x32xf32>
    %c0_67 = arith.constant 0 : index
    %225 = arith.index_cast %190 : i32 to index
    %c0_68 = arith.constant 0 : index
    %c0_69 = arith.constant 0 : index
    %226 = vector.load %arg5[%c0_67, %225, %c0_68, %c0_69] : memref<1x8x2x32xf32, #tpu.memory_space<vmem>>, vector<1x1x2x32xf32>
    %227 = vector.shape_cast %226 : vector<1x1x2x32xf32> to vector<2x32xf32>
    %228 = vector.shape_cast %224 : vector<2x32xf32> to vector<1x1x2x32xf32>
    tpu.vector_store %arg5[%c0_67, %225, %c0_68, %c0_69], %228 {strides = array<i32>} : memref<1x8x2x32xf32, #tpu.memory_space<vmem>>, vector<1x1x2x32xf32>,
    %c5_i32 = arith.constant 5 : i32
    %c7_i32_70 = arith.constant 7 : i32
    %229 = arith.muli %arg0, %c7_i32_70 : i32
    %c2_i32_71 = arith.constant 2 : i32
    %230 = arith.muli %c2_i32_71, %arg0 : i32
    %c1_i32_72 = arith.constant 1 : i32
    %231 = arith.subi %c1_i32_72, %230 : i32
    %232 = arith.muli %231, %c5_i32 : i32
    %233 = arith.addi %229, %232 : i32
    %234 = arith.addi %11, %233 : i32
    %c0_73 = arith.constant 0 : index
    %235 = arith.index_cast %233 : i32 to index
    %c0_74 = arith.constant 0 : index
    %c0_75 = arith.constant 0 : index
    %236 = vector.load %arg3[%c0_73, %235, %c0_74, %c0_75] : memref<1x8x2x128xf32, #tpu.memory_space<vmem>>, vector<1x1x2x128xf32>
    %237 = vector.shape_cast %236 : vector<1x1x2x128xf32> to vector<2x128xf32>
    %cst_76 = arith.constant dense<0.000000e+00> : vector<2x128xf32>
    %238 = tpu.matmul %217, %5, %cst_76 {dimension_numbers = #tpu.dot_dimension_numbers<[1], [0], [0], [1], [0, 0, 1, 1], [], []>} : vector<2x32xf32>, vector<32x128xf32>, vector<2x128xf32> -> vector<2x128xf32>
    %239 = arith.addf %237, %238 : vector<2x128xf32>
    %240 = vector.extract_strided_slice %239 {offsets = [0, 0], sizes = [2, 96], strides = [1, 1]} : vector<2x128xf32> to vector<2x96xf32>
    %241 = arith.negf %240 : vector<2x96xf32>
    %242 = math.exp %241 : vector<2x96xf32>
    %cst_77 = arith.constant 1.000000e+00 : f32
    %243 = vector.broadcast %cst_77 : f32 to vector<2x96xf32>
    %244 = arith.addf %243, %242 : vector<2x96xf32>
    %245 = arith.divf %243, %244 : vector<2x96xf32>
    %246 = vector.extract_strided_slice %245 {offsets = [0, 0], sizes = [2, 32], strides = [1, 1]} : vector<2x96xf32> to vector<2x32xf32>
    %247 = vector.extract_strided_slice %245 {offsets = [0, 32], sizes = [2, 32], strides = [1, 1]} : vector<2x96xf32> to vector<2x32xf32>
    %248 = vector.extract_strided_slice %245 {offsets = [0, 64], sizes = [2, 32], strides = [1, 1]} : vector<2x96xf32> to vector<2x32xf32>
    %249 = vector.extract_strided_slice %239 {offsets = [0, 96], sizes = [2, 32], strides = [1, 1]} : vector<2x128xf32> to vector<2x32xf32>
    %250 = math.tanh %249 : vector<2x32xf32>
    %251 = arith.mulf %247, %220 : vector<2x32xf32>
    %252 = arith.mulf %246, %250 : vector<2x32xf32>
    %253 = arith.addf %251, %252 : vector<2x32xf32>
    %254 = math.tanh %253 : vector<2x32xf32>
    %255 = arith.mulf %248, %254 : vector<2x32xf32>
    %256 = vector.broadcast %234 : i32 to vector<2x1xi32>
    %257 = arith.cmpi slt, %256, %3 : vector<2x1xi32>
    %258 = vector.shape_cast %257 : vector<2x1xi1> to vector<2x1xi1>
    %259 = vector.broadcast %258 : vector<2x1xi1> to vector<2x32xi1>
    %260 = arith.select %259, %255, %217 : vector<2x32xi1>, vector<2x32xf32>
    %261 = vector.shape_cast %257 : vector<2x1xi1> to vector<2x1xi1>
    %262 = vector.broadcast %261 : vector<2x1xi1> to vector<2x32xi1>
    %263 = arith.select %262, %253, %220 : vector<2x32xi1>, vector<2x32xf32>
    %cst_78 = arith.constant 0.000000e+00 : f32
    %264 = vector.shape_cast %257 : vector<2x1xi1> to vector<2x1xi1>
    %265 = vector.broadcast %264 : vector<2x1xi1> to vector<2x32xi1>
    %266 = vector.broadcast %cst_78 : f32 to vector<2x32xf32>
    %267 = arith.select %265, %260, %266 : vector<2x32xi1>, vector<2x32xf32>
    %c0_79 = arith.constant 0 : index
    %268 = arith.index_cast %233 : i32 to index
    %c0_80 = arith.constant 0 : index
    %c0_81 = arith.constant 0 : index
    %269 = vector.load %arg5[%c0_79, %268, %c0_80, %c0_81] : memref<1x8x2x32xf32, #tpu.memory_space<vmem>>, vector<1x1x2x32xf32>
    %270 = vector.shape_cast %269 : vector<1x1x2x32xf32> to vector<2x32xf32>
    %271 = vector.shape_cast %267 : vector<2x32xf32> to vector<1x1x2x32xf32>
    tpu.vector_store %arg5[%c0_79, %268, %c0_80, %c0_81], %271 {strides = array<i32>} : memref<1x8x2x32xf32, #tpu.memory_space<vmem>>, vector<1x1x2x32xf32>,
    %c6_i32 = arith.constant 6 : i32
    %c7_i32_82 = arith.constant 7 : i32
    %272 = arith.muli %arg0, %c7_i32_82 : i32
    %c2_i32_83 = arith.constant 2 : i32
    %273 = arith.muli %c2_i32_83, %arg0 : i32
    %c1_i32_84 = arith.constant 1 : i32
    %274 = arith.subi %c1_i32_84, %273 : i32
    %275 = arith.muli %274, %c6_i32 : i32
    %276 = arith.addi %272, %275 : i32
    %277 = arith.addi %11, %276 : i32
    %c0_85 = arith.constant 0 : index
    %278 = arith.index_cast %276 : i32 to index
    %c0_86 = arith.constant 0 : index
    %c0_87 = arith.constant 0 : index
    %279 = vector.load %arg3[%c0_85, %278, %c0_86, %c0_87] : memref<1x8x2x128xf32, #tpu.memory_space<vmem>>, vector<1x1x2x128xf32>
    %280 = vector.shape_cast %279 : vector<1x1x2x128xf32> to vector<2x128xf32>
    %cst_88 = arith.constant dense<0.000000e+00> : vector<2x128xf32>
    %281 = tpu.matmul %260, %5, %cst_88 {dimension_numbers = #tpu.dot_dimension_numbers<[1], [0], [0], [1], [0, 0, 1, 1], [], []>} : vector<2x32xf32>, vector<32x128xf32>, vector<2x128xf32> -> vector<2x128xf32>
    %282 = arith.addf %280, %281 : vector<2x128xf32>
    %283 = vector.extract_strided_slice %282 {offsets = [0, 0], sizes = [2, 96], strides = [1, 1]} : vector<2x128xf32> to vector<2x96xf32>
    %284 = arith.negf %283 : vector<2x96xf32>
    %285 = math.exp %284 : vector<2x96xf32>
    %cst_89 = arith.constant 1.000000e+00 : f32
    %286 = vector.broadcast %cst_89 : f32 to vector<2x96xf32>
    %287 = arith.addf %286, %285 : vector<2x96xf32>
    %288 = arith.divf %286, %287 : vector<2x96xf32>
    %289 = vector.extract_strided_slice %288 {offsets = [0, 0], sizes = [2, 32], strides = [1, 1]} : vector<2x96xf32> to vector<2x32xf32>
    %290 = vector.extract_strided_slice %288 {offsets = [0, 32], sizes = [2, 32], strides = [1, 1]} : vector<2x96xf32> to vector<2x32xf32>
    %291 = vector.extract_strided_slice %288 {offsets = [0, 64], sizes = [2, 32], strides = [1, 1]} : vector<2x96xf32> to vector<2x32xf32>
    %292 = vector.extract_strided_slice %282 {offsets = [0, 96], sizes = [2, 32], strides = [1, 1]} : vector<2x128xf32> to vector<2x32xf32>
    %293 = math.tanh %292 : vector<2x32xf32>
    %294 = arith.mulf %290, %263 : vector<2x32xf32>
    %295 = arith.mulf %289, %293 : vector<2x32xf32>
    %296 = arith.addf %294, %295 : vector<2x32xf32>
    %297 = math.tanh %296 : vector<2x32xf32>
    %298 = arith.mulf %291, %297 : vector<2x32xf32>
    %299 = vector.broadcast %277 : i32 to vector<2x1xi32>
    %300 = arith.cmpi slt, %299, %3 : vector<2x1xi32>
    %301 = vector.shape_cast %300 : vector<2x1xi1> to vector<2x1xi1>
    %302 = vector.broadcast %301 : vector<2x1xi1> to vector<2x32xi1>
    %303 = arith.select %302, %298, %260 : vector<2x32xi1>, vector<2x32xf32>
    %304 = vector.shape_cast %300 : vector<2x1xi1> to vector<2x1xi1>
    %305 = vector.broadcast %304 : vector<2x1xi1> to vector<2x32xi1>
    %306 = arith.select %305, %296, %263 : vector<2x32xi1>, vector<2x32xf32>
    %cst_90 = arith.constant 0.000000e+00 : f32
    %307 = vector.shape_cast %300 : vector<2x1xi1> to vector<2x1xi1>
    %308 = vector.broadcast %307 : vector<2x1xi1> to vector<2x32xi1>
    %309 = vector.broadcast %cst_90 : f32 to vector<2x32xf32>
    %310 = arith.select %308, %303, %309 : vector<2x32xi1>, vector<2x32xf32>
    %c0_91 = arith.constant 0 : index
    %311 = arith.index_cast %276 : i32 to index
    %c0_92 = arith.constant 0 : index
    %c0_93 = arith.constant 0 : index
    %312 = vector.load %arg5[%c0_91, %311, %c0_92, %c0_93] : memref<1x8x2x32xf32, #tpu.memory_space<vmem>>, vector<1x1x2x32xf32>
    %313 = vector.shape_cast %312 : vector<1x1x2x32xf32> to vector<2x32xf32>
    %314 = vector.shape_cast %310 : vector<2x32xf32> to vector<1x1x2x32xf32>
    tpu.vector_store %arg5[%c0_91, %311, %c0_92, %c0_93], %314 {strides = array<i32>} : memref<1x8x2x32xf32, #tpu.memory_space<vmem>>, vector<1x1x2x32xf32>,
    %c7_i32_94 = arith.constant 7 : i32
    %c7_i32_95 = arith.constant 7 : i32
    %315 = arith.muli %arg0, %c7_i32_95 : i32
    %c2_i32_96 = arith.constant 2 : i32
    %316 = arith.muli %c2_i32_96, %arg0 : i32
    %c1_i32_97 = arith.constant 1 : i32
    %317 = arith.subi %c1_i32_97, %316 : i32
    %318 = arith.muli %317, %c7_i32_94 : i32
    %319 = arith.addi %315, %318 : i32
    %320 = arith.addi %11, %319 : i32
    %c0_98 = arith.constant 0 : index
    %321 = arith.index_cast %319 : i32 to index
    %c0_99 = arith.constant 0 : index
    %c0_100 = arith.constant 0 : index
    %322 = vector.load %arg3[%c0_98, %321, %c0_99, %c0_100] : memref<1x8x2x128xf32, #tpu.memory_space<vmem>>, vector<1x1x2x128xf32>
    %323 = vector.shape_cast %322 : vector<1x1x2x128xf32> to vector<2x128xf32>
    %cst_101 = arith.constant dense<0.000000e+00> : vector<2x128xf32>
    %324 = tpu.matmul %303, %5, %cst_101 {dimension_numbers = #tpu.dot_dimension_numbers<[1], [0], [0], [1], [0, 0, 1, 1], [], []>} : vector<2x32xf32>, vector<32x128xf32>, vector<2x128xf32> -> vector<2x128xf32>
    %325 = arith.addf %323, %324 : vector<2x128xf32>
    %326 = vector.extract_strided_slice %325 {offsets = [0, 0], sizes = [2, 96], strides = [1, 1]} : vector<2x128xf32> to vector<2x96xf32>
    %327 = arith.negf %326 : vector<2x96xf32>
    %328 = math.exp %327 : vector<2x96xf32>
    %cst_102 = arith.constant 1.000000e+00 : f32
    %329 = vector.broadcast %cst_102 : f32 to vector<2x96xf32>
    %330 = arith.addf %329, %328 : vector<2x96xf32>
    %331 = arith.divf %329, %330 : vector<2x96xf32>
    %332 = vector.extract_strided_slice %331 {offsets = [0, 0], sizes = [2, 32], strides = [1, 1]} : vector<2x96xf32> to vector<2x32xf32>
    %333 = vector.extract_strided_slice %331 {offsets = [0, 32], sizes = [2, 32], strides = [1, 1]} : vector<2x96xf32> to vector<2x32xf32>
    %334 = vector.extract_strided_slice %331 {offsets = [0, 64], sizes = [2, 32], strides = [1, 1]} : vector<2x96xf32> to vector<2x32xf32>
    %335 = vector.extract_strided_slice %325 {offsets = [0, 96], sizes = [2, 32], strides = [1, 1]} : vector<2x128xf32> to vector<2x32xf32>
    %336 = math.tanh %335 : vector<2x32xf32>
    %337 = arith.mulf %333, %306 : vector<2x32xf32>
    %338 = arith.mulf %332, %336 : vector<2x32xf32>
    %339 = arith.addf %337, %338 : vector<2x32xf32>
    %340 = math.tanh %339 : vector<2x32xf32>
    %341 = arith.mulf %334, %340 : vector<2x32xf32>
    %342 = vector.broadcast %320 : i32 to vector<2x1xi32>
    %343 = arith.cmpi slt, %342, %3 : vector<2x1xi32>
    %344 = vector.shape_cast %343 : vector<2x1xi1> to vector<2x1xi1>
    %345 = vector.broadcast %344 : vector<2x1xi1> to vector<2x32xi1>
    %346 = arith.select %345, %341, %303 : vector<2x32xi1>, vector<2x32xf32>
    %347 = vector.shape_cast %343 : vector<2x1xi1> to vector<2x1xi1>
    %348 = vector.broadcast %347 : vector<2x1xi1> to vector<2x32xi1>
    %349 = arith.select %348, %339, %306 : vector<2x32xi1>, vector<2x32xf32>
    %cst_103 = arith.constant 0.000000e+00 : f32
    %350 = vector.shape_cast %343 : vector<2x1xi1> to vector<2x1xi1>
    %351 = vector.broadcast %350 : vector<2x1xi1> to vector<2x32xi1>
    %352 = vector.broadcast %cst_103 : f32 to vector<2x32xf32>
    %353 = arith.select %351, %346, %352 : vector<2x32xi1>, vector<2x32xf32>
    %c0_104 = arith.constant 0 : index
    %354 = arith.index_cast %319 : i32 to index
    %c0_105 = arith.constant 0 : index
    %c0_106 = arith.constant 0 : index
    %355 = vector.load %arg5[%c0_104, %354, %c0_105, %c0_106] : memref<1x8x2x32xf32, #tpu.memory_space<vmem>>, vector<1x1x2x32xf32>
    %356 = vector.shape_cast %355 : vector<1x1x2x32xf32> to vector<2x32xf32>
    %357 = vector.shape_cast %353 : vector<2x32xf32> to vector<1x1x2x32xf32>
    tpu.vector_store %arg5[%c0_104, %354, %c0_105, %c0_106], %357 {strides = array<i32>} : memref<1x8x2x32xf32, #tpu.memory_space<vmem>>, vector<1x1x2x32xf32>,
    %c8_i32_107 = arith.constant 8 : i32
    %c0_108 = arith.constant 0 : index
    %c0_109 = arith.constant 0 : index
    %358 = vector.load %arg6[%c0_108, %c0_109] : memref<2x32xf32, #tpu.memory_space<vmem>>, vector<2x32xf32>
    tpu.vector_store %arg6[%c0_108, %c0_109], %346 {strides = array<i32>} : memref<2x32xf32, #tpu.memory_space<vmem>>, vector<2x32xf32>,
    %c0_110 = arith.constant 0 : index
    %c0_111 = arith.constant 0 : index
    %359 = vector.load %arg7[%c0_110, %c0_111] : memref<2x32xf32, #tpu.memory_space<vmem>>, vector<2x32xf32>
    tpu.vector_store %arg7[%c0_110, %c0_111], %349 {strides = array<i32>} : memref<2x32xf32, #tpu.memory_space<vmem>>, vector<2x32xf32>,
    return
  }
  func.func @transform_0(%arg0: i32, %arg1: i32) -> (i32, i32) {
    %c0_i32 = arith.constant 0 : i32
    %c0_i32_0 = arith.constant 0 : i32
    %c0_i32_1 = arith.constant 0 : i32
    return %c0_i32, %c0_i32_0 : i32, i32
  }
  func.func @transform_1(%arg0: i32, %arg1: i32) -> (i32, i32, i32, i32) {
    %c1_i32 = arith.constant 1 : i32
    %0 = arith.subi %c1_i32, %arg0 : i32
    %1 = arith.muli %0, %arg1 : i32
    %c0_i32 = arith.constant 0 : i32
    %2 = arith.subi %c0_i32, %arg1 : i32
    %3 = arith.muli %arg0, %2 : i32
    %4 = arith.addi %1, %3 : i32
    %c0_i32_0 = arith.constant 0 : i32
    %c0_i32_1 = arith.constant 0 : i32
    %c0_i32_2 = arith.constant 0 : i32
    return %arg0, %4, %c0_i32_0, %c0_i32_1 : i32, i32, i32, i32
  }
  func.func @transform_2(%arg0: i32, %arg1: i32) -> (i32, i32, i32) {
    %c0_i32 = arith.constant 0 : i32
    %c0_i32_0 = arith.constant 0 : i32
    %c0_i32_1 = arith.constant 0 : i32
    return %arg0, %c0_i32, %c0_i32_0 : i32, i32, i32
  }
  func.func @transform_3(%arg0: i32, %arg1: i32) -> (i32, i32, i32, i32) {
    %c1_i32 = arith.constant 1 : i32
    %0 = arith.subi %c1_i32, %arg0 : i32
    %1 = arith.muli %0, %arg1 : i32
    %c0_i32 = arith.constant 0 : i32
    %2 = arith.subi %c0_i32, %arg1 : i32
    %3 = arith.muli %arg0, %2 : i32
    %4 = arith.addi %1, %3 : i32
    %c0_i32_0 = arith.constant 0 : i32
    %c0_i32_1 = arith.constant 0 : i32
    %c0_i32_2 = arith.constant 0 : i32
    return %arg0, %4, %c0_i32_0, %c0_i32_1 : i32, i32, i32, i32
  }
}

</mosaic_0001>

<bundles_post_ra>
// kernel: tpu_custom_call.1
= control target key start
LH: loop header
LB: loop body
LE: loop exit
PB: predicated region body
PF: predicated region fallthrough
CT: control target
= control target key end

     0   :  { %8 = vsyncpa [#allocation5], 0  ;;  %s2616_s0 = inlined_call_operand.vmem [shape: s32[2,1], index: 0, kind: input, shape index: {}]   ;;  %s2617_s1 = inlined_call_operand.hbm [shape: f32[2,8,2,128], index: 1, kind: input, shape index: {}]   ;;  %s2618_s2 = inlined_call_operand.hbm [shape: f32[2,32,128], index: 2, kind: input, shape index: {}]   ;;  %s2619_s3 = inlined_call_operand.hbm [shape: f32[2,8,2,32], index: 3, kind: output, shape index: {}]  }
   0x1   :  { %10 = vsyncpa [#allocation5 + $0x1], 0 }
   0x2   :  { %11 = vsyncpa [#allocation8], 0 }
   0x3   :  { %13 = vsyncpa [#allocation8 + $0x1], 0 }
   0x4   :  { %14 = vsyncpa [#allocation6], 0 }
   0x5   :  { %16 = vsyncpa [#allocation6 + $0x1], 0  ;;  %s2055_s12 = smov 0   ;;  %s2057_s13 = smov 0  }
   0x6   :  { %s2059_s14 = smov 0   ;;  %s2061_s15 = smov 0  }
   0x7   :  { %s2063_s16 = smov 0   ;;  %s2065_s17 = smov 0  }
   0x8 LB: > { %s1502_s18 = sadd.s32 4294967295, %s2018_s17   ;;  %s1503_s19 = sadd.s32 4294967294, %s2018_s17   ;;  %s2018_s17 = sphi %s2065_s17, %s22_s17   ;;  %s2014_s16 = sphi %s2063_s16, %s2653_s16   ;;  %s2010_s15 = sphi %s2061_s15, %s2652_s15   ;;  %s2006_s14 = sphi %s2059_s14, %s2651_s14   ;;  %s2002_s13 = sphi %s2057_s13, %s2650_s13   ;;  %s1998_s12 = sphi %s2055_s12, %s2649_s12  }
   0x9   : > { %s34_s20 = sadd.s32 1, %s2014_s16  ;;  %s74_s21 = sadd.s32 1, %s2006_s14 }
   0xa   : > { %p36_p0 = scmp.ge.s32.totalorder %s34_s20, 2  ;;  %p81_p1 = scmp.ne.s32.totalorder %s2006_s14, %s2002_s13 }
   0xb   : > { %p82_p2 = scmp.eq.s32.totalorder %s2018_s17, 0  ;;  %p87_p3 = scmp.ne.s32.totalorder %s2002_s13, %s1998_s12 }
   0xc   : > { %s2655_s20 = smov (%p36_p0, %s34_s20), 0  ;;  %p88_p5 = scmp.eq.s32.totalorder %s1502_s18, 0 }
   0xd   : > { %p2096_p4 = por %p82_p2, %p81_p1  ;;  %s69_s23 = ssub.s32 %s2014_s16, %s2655_s20 }
   0xe   : > { %p149_p6 = scmp.eq.s32.totalorder %s1502_s18, 1  ;;  %p72_p7 = scmp.eq.s32.totalorder %s69_s23, 0 }
   0xf   : > { %p2102_p8 = por %p88_p5, %p87_p3  ;;  %p155_p10 = scmp.eq.s32.totalorder %s1503_s19, 1 }
  0x10   : > { %p2106_p9 = por %p149_p6, %p81_p1  ;;  %p1744_p13 = scmp.lt.s32.totalorder %s2018_s17, 2 }
  0x11   : > { %s2631_s24 = scalar_select %p2102_p8, 1, 0 }
  0x12   : > { %s2632_s25 = scalar_select %p2106_p9, 1, 0 }
  0x13   : > { %s2111_s26 = scalar_select %p72_p7, %s2006_s14, %s74_s21  }
  0x14   : > { %p2113_p11 = por %p155_p10, %p87_p3  ;;  %s2120_s28 = sand.u32 1, %s2006_s14  }
  0x15   : > { %s1506_s29 = sshll.u32 %s2120_s28, 4  ;;  %s1548_s30 = sshll.u32 %s2014_s16, 8 }
  0x16   : > { %s2633_s27 = scalar_select %p2113_p11, 1, 0 }
  0x17   : > { %s2127_s6 = scalar_lea.hbm %s2617_s1, %s1548_s30  ;;  %s182_s7 = scalar_lea.vmem [#allocation4], %s1506_s29 }
  0x18   : > { %s196_s8 = sshll.u32 %s182_s7, 4  ;;  %p2133_p0 = pnand %p1744_p13, %p2096_p4  ;;  %s2129_s8 = int_to_ptr.vmem [resolvable:$true] %s196_s8 }
  0x19   : > { %s179_s10 = scalar_lea.sflag [#allocation5], %s2120_s28  ;;  %s1872_s11 = scalar_lea.hbm %s2127_s6, 256 }
  0x1a   : > { %p1873_p2 = scmp.ne.s32.totalorder %s2127_s6, %s1872_s11  ;;  %p1874_p3 = pneg %p2133_p0 }
  0x1b   : > { %s1877_s21 = scalar_lea.hbm %s2617_s1, 512  ;;  %p1878_p4 = scmp.lt.u32.totalorder %s2127_s6, %s2617_s1 }
  0x1c   : > { %p1875_p5 = pnand %p1874_p3, %p1873_p2  ;;  %p1879_p7 = scmp.lt.u32.totalorder %s1877_s21, %s1872_s11 }
  0x1d   : > { %p1881_p13 = scmp.lt.u32.totalorder %s1872_s11, %s2127_s6 }
  0x1e   : > { %p1876_p6 = pneg %p1875_p5  ;;  %p1880_p10 = por %p1879_p7, %p1878_p4 }
  0x20   : > { %p1882_p12 = por %p1881_p13, %p1880_p10 }
  0x22   : > { %p1883_p1 = pnand %p1882_p12, %p1876_p6 }
  0x24   : > { %1886 = shalt.err (!%p1883_p1)
}
  0x25   : > { %s1887_s29 = scalar_lea.vmem %s2129_s8, 256  ;;  %s2020_s30 = smov [#allocation4]  }
  0x26   : > { %p1888_p2 = scmp.ne.s32.totalorder %s2129_s8, %s1887_s29  ;;  %s1892_s4 = sshll.u32 %s2020_s30, 4  ;;  %s1893_s4 = int_to_ptr.vmem [resolvable:$false] %s1892_s4 }
  0x27   : > { %s1894_s5 = scalar_lea.vmem %s1893_s4, 512  ;;  %p1895_p9 = scmp.lt.s32.totalorder %s2129_s8, %s1893_s4 }
  0x28   : > { %p1890_p5 = pnand %p1888_p2, %p1874_p3  ;;  %p1896_p4 = scmp.lt.s32.totalorder %s1894_s5, %s1887_s29 }
  0x2a   : > { %p1891_p11 = pneg %p1890_p5  ;;  %p1897_p7 = por %p1896_p4, %p1895_p9 }
  0x2c   : > { %p1898_p10 = pnand %p1897_p7, %p1891_p11 }
  0x2e   : > { %1901 = shalt.err (!%p1898_p10)
}
  0x2f   : > { %s2021_s7 = smov 32   ;;  %s2022_s11 = smov 2  }
  0x30   : > { %1736 = dma.hbm_to_vmem [thread:$0]  (!%p2133_p0), %s2127_s6, 256, %s2129_s8, %s179_s10, %s2021_s7, %s2021_s7, %s2022_s11  }
  0x31   : > { %p225_p12 = scmp.lt.s32.totalorder %s2018_s17, 3  ;;  %s1509_s18 = sshll.u32 %s2120_s28, 5 }
  0x32   : > { %s1549_s19 = sshll.u32 %s2014_s16, 9  ;;  %p2635_p9 = scmp.ge.s32.totalorder %s2018_s17, 1 }
  0x33   : > { %s2178_s29 = scalar_lea.hbm %s2618_s2, %s1549_s19  ;;  %s210_s30 = scalar_lea.vmem [#allocation7], %s1509_s18 }
  0x34   : > { %p2171_p11 = pnand %p2635_p9, %p225_p12  ;;  %s217_s4 = sshll.u32 %s210_s30, 4  ;;  %s2180_s4 = int_to_ptr.vmem [resolvable:$true] %s217_s4 }
  0x35   : > { %s207_s6 = scalar_lea.sflag [#allocation8], %s2120_s28  ;;  %s1902_s8 = scalar_lea.hbm %s2178_s29, 512 }
  0x36   : > { %p1903_p1 = scmp.ne.s32.totalorder %s2178_s29, %s1902_s8  ;;  %s1907_s7 = scalar_lea.hbm %s2618_s2, 1024 }
  0x37   : > { %p1908_p2 = scmp.lt.u32.totalorder %s2178_s29, %s2618_s2  ;;  %p1909_p5 = scmp.lt.u32.totalorder %s1907_s7, %s1902_s8 }
  0x38   : > { %p1905_p6 = pnand %p1903_p1, %p1874_p3  ;;  %p1911_p7 = scmp.lt.u32.totalorder %s1902_s8, %s2178_s29 }
  0x39   : > { %p1910_p4 = por %p1909_p5, %p1908_p2 }
  0x3a   : > { %p1906_p13 = pneg %p1905_p6 }
  0x3b   : > { %p1912_p10 = por %p1911_p7, %p1910_p4 }
  0x3d   : > { %p1913_p12 = pnand %p1912_p10, %p1906_p13 }
  0x3f   : > { %1916 = shalt.err (!%p1913_p12)
}
  0x40   : > { %s1917_s18 = scalar_lea.vmem %s2180_s4, 512  ;;  %s2023_s22 = smov [#allocation7]  }
  0x41   : > { %p1918_p9 = scmp.ne.s32.totalorder %s2180_s4, %s1917_s18  ;;  %s1922_s23 = sshll.u32 %s2023_s22, 4  ;;  %s1923_s23 = int_to_ptr.vmem [resolvable:$false] %s1922_s23 }
  0x42   : > { %s1924_s30 = scalar_lea.vmem %s1923_s23, 1024  ;;  %p1925_p8 = scmp.lt.s32.totalorder %s2180_s4, %s1923_s23 }
  0x43   : > { %p1920_p1 = pnand %p1918_p9, %p1874_p3  ;;  %p1926_p2 = scmp.lt.s32.totalorder %s1924_s30, %s1917_s18 }
  0x45   : > { %p1921_p6 = pneg %p1920_p1  ;;  %p1927_p5 = por %p1926_p2, %p1925_p8 }
  0x47   : > { %p1928_p4 = pnand %p1927_p5, %p1921_p6 }
  0x49   : > { %1931 = shalt.err (!%p1928_p4)
}
  0x4a   : > { %s2024_s8 = smov 128   ;;  %s2025_s10 = smov 8  }
  0x4b   : > { %1739 = dma.hbm_to_vmem [thread:$0]  (!%p2133_p0), %s2178_s29, 512, %s2180_s4, %s207_s6, %s2024_s8, %s2024_s8, %s2025_s10  }
  0x4c   : > { %229 = sbr.rel (%p2171_p11) target bundleno = 5737 (0x1669), region = 32  ;;  %s2211_s5 = sand.u32 (!%p2171_p11), 1, %s2002_s13  }
  0x4d   : > { %s1513_s7 = sshll.u32 (!%p2171_p11), %s2211_s5, 4  ;;  %s232_s11 = scalar_lea.sflag (!%p2171_p11), [#allocation5], %s2211_s5 }
  0x4e   : > { %s2217_s19 = scalar_lea.vmem (!%p2171_p11), [#allocation4], %s1513_s7  ;;  %p2637_p8 = scmp.ne.s32.totalorder (!%p2171_p11), %s2631_s24, 0 }
  0x53   : > { %1985 = dma.done.wait (%p2637_p8), %s232_s11, 256  }
  0x54   : > { %1987 = vsyncadd (%p2637_p8), %s232_s11, 4294967040  ;;  %s1514_s28 = sshll.u32 %s2211_s5, 5  ;;  %s241_s9 = scalar_lea.sflag [#allocation8], %s2211_s5 }
  0x55   : > { %s244_s21 = scalar_lea.vmem [#allocation7], %s1514_s28 }
  0x56   : > { %1989 = dma.done.wait (%p2637_p8), %s241_s9, 512  }
  0x57   : > { %1991 = vsyncadd (%p2637_p8), %s241_s9, 4294966784  ;;  %vm288_vm0 = vcmask 254976   ;;  %v2026_v0 = vmov 0.0|0.0   ;;  %vm2027_vm1 = vmmov 0   ;;  %v2028_v1 = vmov 0.0   ;;  %v292_v2 = vld [vmem:[%s244_s21] sm:$0xff] }
  0x58   : > { %1679 = vmatprep.subr.bf16.mxu0 %v2026_v0  ;;  %1599 = vmatprep.mubr.msk.f32.mxu0 %vm2027_vm1, %v2028_v1  ;;  %289 = vst.msk [vmem:[#allocation2] sm:$0x3] %vm288_vm0, %v2028_v1  ;;  %290 = vst.msk [vmem:[#allocation3] sm:$0x3] %vm288_vm0, %v2028_v1  ;;  %v293_v3 = vld [vmem:[%s244_s21 + $0x8] sm:$0xff]  ;;  %v294_v4 = vld [vmem:[%s244_s21 + $0x10] sm:$0xff] }
  0x59   : > { %1685 = vmatprep.subr.bf16.mxu1 %v2026_v0  ;;  %1610 = vmatprep.mubr.msk.f32.mxu1 %vm2027_vm1, %v2028_v1  ;;  %v2239_v5 = vpack.c.bf16 %v293_v3, %v292_v2  ;;  %v295_v6 = vld [vmem:[%s244_s21 + $0x18] sm:$0xff]  ;;  %vm309_vm2 = vcmask 261120   ;;  %s2628_s24 = smul.u32 14, %s2010_s15  ;;  %v2029_v13 = vmov 0   ;;  %s2629_s4 = smov 32  }
  0x5a   : > { %v2242_v7 = vpack.c.bf16 %v295_v6, %v294_v4  ;;  %1806 = vset.pattern.permute.xlu1 %v2029_v13  ;;  %1807 = vset.pattern.permute.xlu0 %v2029_v13  ;;  %s2267_s6 = smul.u32 7, %s2010_s15  ;;  %v2272_v19 = vld [vmem:[%s2616_s0] sm:$0x3]  ;;  %s2031_s23 = smov 64  }
  0x5b   : > { %1681 = vmatpush3.bf16.msra.mxu0 %v2239_v5  ;;  %1687 = vmatpush3.bf16.msra.mxu1 %v2239_v5  ;;  %s307_s29 = scalar_lea.vmem %s2217_s19, %s2628_s24 [#allocation4]  ;;  %s1519_s30 = sshll.u32 %s2010_s15, 1 }
  0x5c   : > { %1682 = vmatprep.subr.bf16.mxu0 %v2026_v0  ;;  %1688 = vmatprep.subr.bf16.mxu1 %v2026_v0  ;;  %v308_v9 = vld [vmem:[%s307_s29] sm:$0x3]  ;;  %v412_v20 = vstv %s2267_s6  ;;  %s2297_s8 = ssub.s32 1, %s1519_s30  ;;  %p2645_p3 = scmp.ne.s32.totalorder %s2632_s25, 0 }
  0x5d   : > { %vm413_vm3 = vcmp.lt.s32.totalorder %v412_v20, %v2272_v19  ;;  %s2301_s10 = sadd.s32 %s2297_s8, %s2267_s6  ;;  %s1523_s9 = sshll.u32 %s2297_s8, 1 }
  0x5e   : > { %v414_v24 = vsel %vm413_vm3, 1, %v2029_v13  ;;  %s2626_s11 = sshll.u32 %s2301_s10, 1  ;;  %v539_v40 = vstv %s2301_s10  ;;  %s2333_s21 = sadd.s32 %s1523_s9, %s2267_s6 }
  0x5f   : > { %1684 = vmatpush3.bf16.msra.mxu0 %v2242_v7  ;;  %v302_v8 = vld [vmem:[#allocation2] sm:$0x3]  ;;  %1690 = vmatpush3.bf16.msra.mxu1 %v2242_v7  ;;  %v303_v15 = vld [vmem:[#allocation3] sm:$0x3]  ;;  %s437_s28 = scalar_lea.vmem %s2217_s19, %s2626_s11 [#allocation4]  ;;  %vm540_vm5 = vcmp.lt.s32.totalorder %v539_v40, %v2272_v19  ;;  %s2624_s29 = sshll.u32 %s2333_s21, 1  ;;  %v661_v63 = vstv %s2333_s21 }
  0x60   : > { %1691 = vmatprep.subr.bf16.mxu0 %v2026_v0  ;;  %1697 = vmatprep.subr.bf16.mxu1 %v2026_v0  ;;  %v438_v36 = vld [vmem:[%s437_s28] sm:$0x3]  ;;  %v541_v42 = vsel %vm540_vm5, 1, %v2029_v13  ;;  %s559_s18 = scalar_lea.vmem %s2217_s19, %s2624_s29 [#allocation4]  ;;  %vm662_vm7 = vcmp.lt.s32.totalorder %v661_v63, %v2272_v19  ;;  %s677_s22 = smul.u32 3, %s2297_s8 }
  0x61   : > { %v560_v59 = vld [vmem:[%s559_s18] sm:$0x3]  ;;  %v663_v3 = vsel %vm662_vm7, 1, %v2029_v13  ;;  %s1530_s18 = sshll.u32 %s2297_s8, 2 }
  0x62   : > { %1600 = vmatmul.mubr.msk.f32.vlgmr.msra.gmra.mrb[0].mxu0 %vm309_vm2, %v302_v8  ;;  %s2365_s30 = sadd.s32 %s677_s22, %s2267_s6  ;;  %s2396_s22 = sadd.s32 %s1530_s18, %s2267_s6 }
  0x63   : > { %1693 = vmatpush3.bf16.msra.mxu0 %v2239_v5  ;;  %1621 = vmatprep.mubr.msk.f32.mxu0 %vm2027_vm1, %v2028_v1  ;;  %s2622_s28 = sshll.u32 %s2365_s30, 1 }
  0x64   : > { %1694 = vmatprep.subr.bf16.mxu0 %v2026_v0  ;;  %s681_s9 = scalar_lea.vmem %s2217_s19, %s2622_s28 [#allocation4] }
  0x67   : > { %1696 = vmatpush3.bf16.msra.mxu0 %v2242_v7 }
  0x68   : > { %1703 = vmatprep.subr.bf16.mxu0 %v2026_v0 }
 0x135   : > { %v379_v10 = vpop.f32.mrb[0].mxu0 }
 0x136   : > { %v383_v11 = vadd.f32 %v379_v10, %v308_v9  ;;  %v1601_v12 = vpop.f32.mrb[1].mxu0 }
 0x138   : > { %1808 = vtanh.f32 %v383_v11  ;;  %v1518_v16 = vmul.f32 -1.442695, %v383_v11 }
 0x13a   : > { %1810 = vpow2.f32 %v1518_v16 }
 0x142   : > { %v1809_v14 = vpop.eup %1808 }
 0x143   : > { %397 = vrot.lane.b32.xlu0 %v1809_v14, %s2629_s4 }
 0x144   : > { %v1811_v17 = vpop.eup %1810 }
 0x145   : > { %v387_v18 = vadd.f32 1.0, %v1811_v17 }
 0x147   : > { %392 = vrot.lane.b32.xlu0 %v303_v15, %s2629_s4  ;;  %1812 = vrcp.f32 %v387_v18 }
 0x151   : > { %v1813_v21 = vpop.eup %1812 }
 0x1b5   : > { %v398_v22 = vpop.permute.xlu0 %397 }
 0x1b6   : > { %v400_v23 = vmul.f32 %v1813_v21, %v398_v22 }
 0x1b8   : > { %402 = vrot.lane.b32.xlu1 %v400_v23, %s2629_s4 }
 0x1b9   : > { %v393_v25 = vpop.permute.xlu0 %392 }
 0x1ba   : > { %v395_v26 = vmul.f32 %v1813_v21, %v393_v25 }
 0x1bc   : > { %416 = vperm.xlu1 %1806, %v414_v24   ;;  %v682_v24 = vld [vmem:[%s681_s9] sm:$0x3]  ;;  %s2623_s9 = sshll.u32 %s2396_s22, 1 }
 0x1bd   : > { %s803_s28 = scalar_lea.vmem %s2217_s19, %s2623_s9 [#allocation4] }
 0x1c0   : > { %419 = vrot.lane.b32.xlu1 %v302_v8, %s2031_s23 }
 0x22a   : > { %v403_v27 = vpop.permute.xlu1 %402 }
 0x22b   : > { %v405_v28 = vadd.f32 %v403_v27, %v395_v26 }
 0x22d   : > { %1814 = vtanh.f32 %v405_v28 }
 0x237   : > { %v1815_v29 = vpop.eup %1814 }
 0x238   : > { %408 = vrot.lane.b32.xlu0 %v1815_v29, %s2629_s4 }
 0x23b   : > { %v2280_v30 = vpop.permute.xlu1 %416 }
 0x23c   : > { %vm418_vm4 = vcmp.eq.s32.totalorder %v2280_v30, 1 }
 0x23d   : > { %v423_v49 = vsel %vm418_vm4, %v405_v28, %v393_v25  ;;  %v783_v28 = vstv %s2365_s30 }
 0x23e   : > { %vm784_vm9 = vcmp.lt.s32.totalorder %v783_v28, %v2272_v19 }
 0x23f   : > { %v420_v32 = vpop.permute.xlu1 %419 }
 0x2aa   : > { %v409_v31 = vpop.permute.xlu0 %408 }
 0x2ab   : > { %v2282_v33 = vmul.f32 %v1813_v21, %v409_v31  ;;  %v785_v31 = vsel %vm784_vm9, 1, %v2029_v13 }
 0x2ad   : > { %v422_v34 = vsel %vm418_vm4, %v2282_v33, %v420_v32 }
 0x2ae   : > { %440 = vrot.lane.b32.xlu0 %v422_v34, %s2031_s23 }
 0x320   : > { %v441_v35 = vpop.permute.xlu0 %440 }
 0x321   : > { %1611 = vmatmul.mubr.msk.f32.vlgmr.msra.gmra.mrb[0].mxu1 %vm309_vm2, %v441_v35 }
 0x322   : > { %1699 = vmatpush3.bf16.msra.mxu1 %v2239_v5  ;;  %1632 = vmatprep.mubr.msk.f32.mxu1 %vm2027_vm1, %v2028_v1 }
 0x323   : > { %1700 = vmatprep.subr.bf16.mxu1 %v2026_v0 }
 0x326   : > { %1702 = vmatpush3.bf16.msra.mxu1 %v2242_v7 }
 0x327   : > { %1709 = vmatprep.subr.bf16.mxu1 %v2026_v0 }
 0x3f4   : > { %v510_v37 = vpop.f32.mrb[0].mxu1 }
 0x3f5   : > { %v514_v38 = vadd.f32 %v510_v37, %v438_v36  ;;  %v1612_v39 = vpop.f32.mrb[1].mxu1 }
 0x3f7   : > { %1816 = vtanh.f32 %v514_v38  ;;  %v1522_v43 = vmul.f32 -1.442695, %v514_v38 }
 0x3f9   : > { %1818 = vpow2.f32 %v1522_v43 }
 0x401   : > { %v1817_v41 = vpop.eup %1816 }
 0x402   : > { %524 = vrot.lane.b32.xlu1 %v1817_v41, %s2629_s4 }
 0x403   : > { %v1819_v44 = vpop.eup %1818 }
 0x404   : > { %v518_v45 = vadd.f32 1.0, %v1819_v44 }
 0x406   : > { %543 = vperm.xlu1 %1806, %v541_v42   ;;  %1820 = vrcp.f32 %v518_v45 }
 0x410   : > { %v1821_v46 = vpop.eup %1820 }
 0x411   : > { %v522_v50 = vmul.f32 %v1821_v46, %v423_v49 }
 0x474   : > { %v525_v47 = vpop.permute.xlu1 %524 }
 0x475   : > { %v527_v48 = vmul.f32 %v1821_v46, %v525_v47 }
 0x477   : > { %529 = vrot.lane.b32.xlu0 %v527_v48, %s2629_s4 }
 0x485   : > { %v2315_v54 = vpop.permute.xlu1 %543 }
 0x486   : > { %vm545_vm6 = vcmp.eq.s32.totalorder %v2315_v54, 1 }
 0x4e9   : > { %v530_v51 = vpop.permute.xlu0 %529 }
 0x4ea   : > { %v532_v52 = vadd.f32 %v530_v51, %v522_v50 }
 0x4ec   : > { %1822 = vtanh.f32 %v532_v52  ;;  %v547_v12 = vsel %vm545_vm6, %v532_v52, %v423_v49  ;;  %v804_v49 = vld [vmem:[%s803_s28] sm:$0x3]  ;;  %s921_s28 = smul.u32 5, %s2297_s8 }
 0x4ee   : > { %s2427_s18 = sadd.s32 %s921_s28, %s2267_s6 }
 0x4ef   : > { %s2625_s9 = sshll.u32 %s2427_s18, 1 }
 0x4f0   : > { %s925_s29 = scalar_lea.vmem %s2217_s19, %s2625_s9 [#allocation4] }
 0x4f6   : > { %v1823_v53 = vpop.eup %1822 }
 0x4f7   : > { %535 = vrot.lane.b32.xlu0 %v1823_v53, %s2629_s4  ;;  %v905_v53 = vstv %s2396_s22 }
 0x4f8   : > { %vm906_vm11 = vcmp.lt.s32.totalorder %v905_v53, %v2272_v19 }
 0x569   : > { %v536_v55 = vpop.permute.xlu0 %535 }
 0x56a   : > { %v2317_v56 = vmul.f32 %v1821_v46, %v536_v55 }
 0x56c   : > { %v546_v57 = vsel %vm545_vm6, %v2317_v56, %v422_v34 }
 0x56d   : > { %562 = vrot.lane.b32.xlu1 %v546_v57, %s2031_s23 }
 0x5df   : > { %v563_v58 = vpop.permute.xlu1 %562 }
 0x5e0   : > { %1622 = vmatmul.mubr.msk.f32.vlgmr.msra.gmra.mrb[2].mxu0 %vm309_vm2, %v563_v58 }
 0x5e1   : > { %1705 = vmatpush3.bf16.msra.mxu0 %v2239_v5  ;;  %1643 = vmatprep.mubr.msk.f32.mxu0 %vm2027_vm1, %v2028_v1 }
 0x5e2   : > { %1706 = vmatprep.subr.bf16.mxu0 %v2026_v0 }
 0x5e5   : > { %1708 = vmatpush3.bf16.msra.mxu0 %v2242_v7 }
 0x5e6   : > { %1715 = vmatprep.subr.bf16.mxu0 %v2026_v0 }
 0x6b3   : > { %v632_v60 = vpop.f32.mrb[2].mxu0 }
 0x6b4   : > { %v636_v61 = vadd.f32 %v632_v60, %v560_v59  ;;  %v1623_v62 = vpop.f32.mrb[3].mxu0 }
 0x6b6   : > { %1824 = vtanh.f32 %v636_v61  ;;  %v1526_v4 = vmul.f32 -1.442695, %v636_v61 }
 0x6b8   : > { %1826 = vpow2.f32 %v1526_v4 }
 0x6c0   : > { %v1825_v2 = vpop.eup %1824 }
 0x6c1   : > { %646 = vrot.lane.b32.xlu0 %v1825_v2, %s2629_s4 }
 0x6c2   : > { %v1827_v6 = vpop.eup %1826 }
 0x6c3   : > { %v640_v8 = vadd.f32 1.0, %v1827_v6 }
 0x6c5   : > { %665 = vperm.xlu0 %1807, %v663_v3   ;;  %1828 = vrcp.f32 %v640_v8 }
 0x6cf   : > { %v1829_v9 = vpop.eup %1828 }
 0x6d0   : > { %v644_v14 = vmul.f32 %v1829_v9, %v547_v12 }
 0x733   : > { %v647_v10 = vpop.permute.xlu0 %646 }
 0x734   : > { %v649_v11 = vmul.f32 %v1829_v9, %v647_v10 }
 0x736   : > { %651 = vrot.lane.b32.xlu1 %v649_v11, %s2629_s4 }
 0x744   : > { %v2347_v18 = vpop.permute.xlu0 %665 }
 0x745   : > { %vm667_vm8 = vcmp.eq.s32.totalorder %v2347_v18, 1 }
 0x7a8   : > { %v652_v15 = vpop.permute.xlu1 %651 }
 0x7a9   : > { %v654_v16 = vadd.f32 %v652_v15, %v644_v14  ;;  %v926_v15 = vld [vmem:[%s925_s29] sm:$0x3]  ;;  %s1043_s29 = smul.u32 6, %s2297_s8 }
 0x7ab   : > { %1830 = vtanh.f32 %v654_v16  ;;  %v669_v39 = vsel %vm667_vm8, %v654_v16, %v547_v12  ;;  %s2453_s28 = sadd.s32 %s1043_s29, %s2267_s6 }
 0x7ac   : > { %s2627_s9 = sshll.u32 %s2453_s28, 1 }
 0x7ad   : > { %s1047_s11 = scalar_lea.vmem %s2217_s19, %s2627_s9 [#allocation4] }
 0x7b5   : > { %v1831_v17 = vpop.eup %1830 }
 0x7b6   : > { %657 = vrot.lane.b32.xlu1 %v1831_v17, %s2629_s4 }
 0x828   : > { %v658_v20 = vpop.permute.xlu1 %657 }
 0x829   : > { %v2349_v21 = vmul.f32 %v1829_v9, %v658_v20  ;;  %v1027_v20 = vstv %s2427_s18 }
 0x82a   : > { %vm1028_vm13 = vcmp.lt.s32.totalorder %v1027_v20, %v2272_v19 }
 0x82b   : > { %v668_v22 = vsel %vm667_vm8, %v2349_v21, %v546_v57  ;;  %v907_v57 = vsel %vm906_vm11, 1, %v2029_v13 }
 0x82c   : > { %684 = vrot.lane.b32.xlu1 %v668_v22, %s2031_s23 }
 0x89e   : > { %v685_v23 = vpop.permute.xlu1 %684 }
 0x89f   : > { %1633 = vmatmul.mubr.msk.f32.vlgmr.msra.gmra.mrb[2].mxu1 %vm309_vm2, %v685_v23 }
 0x8a0   : > { %1711 = vmatpush3.bf16.msra.mxu1 %v2239_v5  ;;  %1654 = vmatprep.mubr.msk.f32.mxu1 %vm2027_vm1, %v2028_v1 }
 0x8a1   : > { %1712 = vmatprep.subr.bf16.mxu1 %v2026_v0 }
 0x8a4   : > { %1714 = vmatpush3.bf16.msra.mxu1 %v2242_v7 }
 0x8a5   : > { %1721 = vmatprep.subr.bf16.mxu1 %v2026_v0 }
 0x972   : > { %v754_v25 = vpop.f32.mrb[2].mxu1 }
 0x973   : > { %v758_v26 = vadd.f32 %v754_v25, %v682_v24  ;;  %v1634_v27 = vpop.f32.mrb[3].mxu1 }
 0x975   : > { %1832 = vtanh.f32 %v758_v26  ;;  %v1529_v32 = vmul.f32 -1.442695, %v758_v26 }
 0x977   : > { %1834 = vpow2.f32 %v1529_v32 }
 0x97f   : > { %v1833_v29 = vpop.eup %1832 }
 0x980   : > { %768 = vrot.lane.b32.xlu0 %v1833_v29, %s2629_s4 }
 0x981   : > { %v1835_v34 = vpop.eup %1834 }
 0x982   : > { %v762_v35 = vadd.f32 1.0, %v1835_v34 }
 0x984   : > { %787 = vperm.xlu0 %1807, %v785_v31   ;;  %1836 = vrcp.f32 %v762_v35 }
 0x98e   : > { %v1837_v36 = vpop.eup %1836 }
 0x98f   : > { %v766_v40 = vmul.f32 %v1837_v36, %v669_v39 }
 0x9f2   : > { %v769_v37 = vpop.permute.xlu0 %768 }
 0x9f3   : > { %v771_v38 = vmul.f32 %v1837_v36, %v769_v37 }
 0x9f5   : > { %773 = vrot.lane.b32.xlu1 %v771_v38, %s2629_s4 }
 0xa03   : > { %v2379_v44 = vpop.permute.xlu0 %787 }
 0xa04   : > { %vm789_vm10 = vcmp.eq.s32.totalorder %v2379_v44, 1 }
 0xa67   : > { %v774_v41 = vpop.permute.xlu1 %773 }
 0xa68   : > { %v776_v42 = vadd.f32 %v774_v41, %v766_v40 }
 0xa6a   : > { %1838 = vtanh.f32 %v776_v42  ;;  %v791_v2 = vsel %vm789_vm10, %v776_v42, %v669_v39  ;;  %v1048_v39 = vld [vmem:[%s1047_s11] sm:$0x3]  ;;  %s1165_s11 = smul.u32 7, %s2297_s8 }
 0xa6c   : > { %s2475_s29 = sadd.s32 %s1165_s11, %s2267_s6  ;;  %s2640_s11 = sshll.u32 %s2333_s21, 1 }
 0xa6d   : > { %s1540_s9 = sshll.u32 %s2475_s29, 1 }
 0xa6e   : > { %s1169_s24 = scalar_lea.vmem %s2217_s19, %s1540_s9 [#allocation4]  ;;  %s2502_s19 = scalar_lea.vmem [#allocation9], %s1513_s7 }
 0xa6f   : > { %s2639_s7 = sshll.u32 %s2301_s10, 1  ;;  %s2641_s10 = sshll.u32 %s2365_s30, 1 }
 0xa70   : > { %s553_s8 = scalar_lea.vmem %s2502_s19, %s2639_s7 [#allocation9]  ;;  %s797_s21 = scalar_lea.vmem %s2502_s19, %s2641_s10 [#allocation9] }
 0xa71   : > { %s2644_s30 = sshll.u32 %s2453_s28, 1 }
 0xa74   : > { %v1839_v43 = vpop.eup %1838 }
 0xa75   : > { %779 = vrot.lane.b32.xlu1 %v1839_v43, %s2629_s4  ;;  %v1149_v43 = vstv %s2453_s28 }
 0xa76   : > { %vm1150_vm15 = vcmp.lt.s32.totalorder %v1149_v43, %v2272_v19 }
 0xae7   : > { %v780_v45 = vpop.permute.xlu1 %779 }
 0xae8   : > { %v2381_v46 = vmul.f32 %v1837_v36, %v780_v45 }
 0xaea   : > { %v790_v47 = vsel %vm789_vm10, %v2381_v46, %v668_v22 }
 0xaeb   : > { %806 = vrot.lane.b32.xlu0 %v790_v47, %s2031_s23 }
 0xb5d   : > { %v807_v48 = vpop.permute.xlu0 %806 }
 0xb5e   : > { %1644 = vmatmul.mubr.msk.f32.vlgmr.msra.gmra.mrb[4].mxu0 %vm309_vm2, %v807_v48 }
 0xb5f   : > { %1717 = vmatpush3.bf16.msra.mxu0 %v2239_v5  ;;  %1665 = vmatprep.mubr.msk.f32.mxu0 %vm2027_vm1, %v2028_v1 }
 0xb60   : > { %1718 = vmatprep.subr.bf16.mxu0 %v2026_v0 }
 0xb63   : > { %1720 = vmatpush3.bf16.msra.mxu0 %v2242_v7 }
 0xc31   : > { %v876_v50 = vpop.f32.mrb[4].mxu0 }
 0xc32   : > { %v880_v51 = vadd.f32 %v876_v50, %v804_v49  ;;  %v1645_v52 = vpop.f32.mrb[5].mxu0 }
 0xc34   : > { %1840 = vtanh.f32 %v880_v51  ;;  %v1533_v58 = vmul.f32 -1.442695, %v880_v51 }
 0xc36   : > { %1842 = vpow2.f32 %v1533_v58 }
 0xc3e   : > { %v1841_v55 = vpop.eup %1840 }
 0xc3f   : > { %890 = vrot.lane.b32.xlu1 %v1841_v55, %s2629_s4 }
 0xc40   : > { %v1843_v59 = vpop.eup %1842 }
 0xc41   : > { %v884_v60 = vadd.f32 1.0, %v1843_v59 }
 0xc43   : > { %909 = vperm.xlu1 %1806, %v907_v57   ;;  %1844 = vrcp.f32 %v884_v60 }
 0xc4d   : > { %v1845_v61 = vpop.eup %1844 }
 0xc4e   : > { %v888_v3 = vmul.f32 %v1845_v61, %v791_v2 }
 0xcb1   : > { %v891_v62 = vpop.permute.xlu1 %890 }
 0xcb2   : > { %v893_v63 = vmul.f32 %v1845_v61, %v891_v62 }
 0xcb4   : > { %895 = vrot.lane.b32.xlu0 %v893_v63, %s2629_s4 }
 0xcc2   : > { %v2410_v9 = vpop.permute.xlu1 %909 }
 0xcc3   : > { %vm911_vm12 = vcmp.eq.s32.totalorder %v2410_v9, 1 }
 0xd26   : > { %v896_v4 = vpop.permute.xlu0 %895 }
 0xd27   : > { %v898_v6 = vadd.f32 %v896_v4, %v888_v3  ;;  %v1170_v4 = vld [vmem:[%s1169_s24] sm:$0x3]  ;;  %s2638_s24 = smul.u32 14, %s2010_s15 }
 0xd29   : > { %1846 = vtanh.f32 %v898_v6  ;;  %v913_v27 = vsel %vm911_vm12, %v898_v6, %v791_v2  ;;  %s429_s6 = scalar_lea.vmem %s2502_s19, %s2638_s24 [#allocation9]  ;;  %s675_s24 = scalar_lea.vmem %s2502_s19, %s2640_s11 [#allocation9] }
 0xd2a   : > { %s2032_s11 = smov 96  }
 0xd33   : > { %v1847_v8 = vpop.eup %1846 }
 0xd34   : > { %901 = vrot.lane.b32.xlu0 %v1847_v8, %s2629_s4 }
 0xda6   : > { %v902_v10 = vpop.permute.xlu0 %901 }
 0xda7   : > { %v2412_v11 = vmul.f32 %v1845_v61, %v902_v10 }
 0xda9   : > { %v912_v12 = vsel %vm911_vm12, %v2412_v11, %v790_v47  ;;  %v1151_v47 = vsel %vm1150_vm15, 1, %v2029_v13 }
 0xdaa   : > { %928 = vrot.lane.b32.xlu1 %v912_v12, %s2031_s23 }
 0xe1c   : > { %v929_v14 = vpop.permute.xlu1 %928 }
 0xe1d   : > { %1655 = vmatmul.mubr.msk.f32.vlgmr.msra.gmra.mrb[4].mxu1 %vm309_vm2, %v929_v14 }
 0xe1e   : > { %1723 = vmatpush3.bf16.msra.mxu1 %v2239_v5  ;;  %1676 = vmatprep.mubr.msk.f32.mxu1 %vm2027_vm1, %v2028_v1  ;;  %v1029_v1 = vsel %vm1028_vm13, 1, %v2029_v13 }
 0xe1f   : > { %1724 = vmatprep.subr.bf16.mxu1 %v2026_v0 }
 0xe22   : > { %1726 = vmatpush3.bf16.msra.mxu1 %v2242_v7 }
 0xef0   : > { %v998_v16 = vpop.f32.mrb[4].mxu1 }
 0xef1   : > { %v1002_v17 = vadd.f32 %v998_v16, %v926_v15  ;;  %v1656_v5 = vpop.f32.mrb[5].mxu1  ;;  %v424_v16 = vsel %vm418_vm4, %v2282_v33, 0.0 }
 0xef3   : > { %1848 = vtanh.f32 %v1002_v17  ;;  %v1536_v7 = vmul.f32 -1.442695, %v1002_v17  ;;  %v670_v17 = vsel %vm667_vm8, %v2349_v21, 0.0 }
 0xef5   : > { %1850 = vpow2.f32 %v1536_v7 }
 0xefd   : > { %v1849_v0 = vpop.eup %1848 }
 0xefe   : > { %1012 = vrot.lane.b32.xlu0 %v1849_v0, %s2629_s4 }
 0xeff   : > { %v1851_v22 = vpop.eup %1850 }
 0xf00   : > { %v1006_v23 = vadd.f32 1.0, %v1851_v22 }
 0xf02   : > { %1031 = vperm.xlu0 %1807, %v1029_v1   ;;  %1852 = vrcp.f32 %v1006_v23 }
 0xf0c   : > { %v1853_v24 = vpop.eup %1852 }
 0xf0d   : > { %v1010_v28 = vmul.f32 %v1853_v24, %v913_v27 }
 0xf70   : > { %v1013_v25 = vpop.permute.xlu0 %1012 }
 0xf71   : > { %v1015_v26 = vmul.f32 %v1853_v24, %v1013_v25  ;;  %v548_v25 = vsel %vm545_vm6, %v2317_v56, 0.0 }
 0xf73   : > { %1017 = vrot.lane.b32.xlu1 %v1015_v26, %s2629_s4  ;;  %v792_v26 = vsel %vm789_vm10, %v2381_v46, 0.0 }
 0xf81   : > { %v2441_v34 = vpop.permute.xlu0 %1031 }
 0xf82   : > { %vm1033_vm14 = vcmp.eq.s32.totalorder %v2441_v34, 1 }
 0xfe5   : > { %v1018_v29 = vpop.permute.xlu1 %1017 }
 0xfe6   : > { %v1020_v31 = vadd.f32 %v1018_v29, %v1010_v28 }
 0xfe8   : > { %1854 = vtanh.f32 %v1020_v31  ;;  %v1035_v55 = vsel %vm1033_vm14, %v1020_v31, %v913_v27 }
 0xff2   : > { %v1855_v32 = vpop.eup %1854 }
 0xff3   : > { %1023 = vrot.lane.b32.xlu1 %v1855_v32, %s2629_s4 }
0x1065   : > { %v1024_v35 = vpop.permute.xlu1 %1023 }
0x1066   : > { %v2443_v36 = vmul.f32 %v1853_v24, %v1024_v35 }
0x1068   : > { %v1034_v37 = vsel %vm1033_vm14, %v2443_v36, %v912_v12  ;;  %v1271_v12 = vstv %s2475_s29  ;;  %v1036_v27 = vsel %vm1033_vm14, %v2443_v36, 0.0  ;;  %s2033_s29 = smov [#allocation9]  }
0x1069   : > { %1050 = vrot.lane.b32.xlu0 %v1034_v37, %s2031_s23  ;;  %vm1272_vm3 = vcmp.lt.s32.totalorder %v1271_v12, %v2272_v19  ;;  %v914_v19 = vsel %vm911_vm12, %v2412_v11, 0.0 }
0x106a   : > { %v1273_v15 = vsel %vm1272_vm3, 1, %v2029_v13 }
0x10db   : > { %v1051_v38 = vpop.permute.xlu0 %1050 }
0x10dc   : > { %1666 = vmatmul.mubr.msk.f32.vlgmr.msra.gmra.mrb[6].mxu0 %vm309_vm2, %v1051_v38 }
0x11af   : > { %v1120_v40 = vpop.f32.mrb[6].mxu0 }
0x11b0   : > { %v1124_v41 = vadd.f32 %v1120_v40, %v1048_v39  ;;  %v1667_v42 = vpop.f32.mrb[7].mxu0 }
0x11b2   : > { %1856 = vtanh.f32 %v1124_v41  ;;  %v1539_v48 = vmul.f32 -1.442695, %v1124_v41 }
0x11b4   : > { %1858 = vpow2.f32 %v1539_v48 }
0x11bc   : > { %v1857_v45 = vpop.eup %1856 }
0x11bd   : > { %1134 = vrot.lane.b32.xlu1 %v1857_v45, %s2629_s4 }
0x11be   : > { %v1859_v49 = vpop.eup %1858 }
0x11bf   : > { %v1128_v50 = vadd.f32 1.0, %v1859_v49 }
0x11c1   : > { %1153 = vperm.xlu1 %1806, %v1151_v47   ;;  %1860 = vrcp.f32 %v1128_v50 }
0x11cb   : > { %v1861_v51 = vpop.eup %1860 }
0x11cc   : > { %v1132_v57 = vmul.f32 %v1861_v51, %v1035_v55 }
0x122f   : > { %v1135_v52 = vpop.permute.xlu1 %1134 }
0x1230   : > { %v1137_v53 = vmul.f32 %v1861_v51, %v1135_v52 }
0x1232   : > { %1139 = vrot.lane.b32.xlu0 %v1137_v53, %s2629_s4 }
0x1240   : > { %v1154_v61 = vpop.permute.xlu1 %1153 }
0x1241   : > { %vm1155_vm1 = vcmp.eq.s32.totalorder %v1154_v61, 1 }
0x12a4   : > { %v1140_v58 = vpop.permute.xlu0 %1139 }
0x12a5   : > { %v1142_v59 = vadd.f32 %v1140_v58, %v1132_v57 }
0x12a7   : > { %1862 = vtanh.f32 %v1142_v59  ;;  %v1157_v11 = vsel %vm1155_vm1, %v1142_v59, %v1035_v55 }
0x12b1   : > { %v1863_v60 = vpop.eup %1862 }
0x12b2   : > { %1145 = vrot.lane.b32.xlu0 %v1863_v60, %s2629_s4 }
0x1324   : > { %v1146_v62 = vpop.permute.xlu0 %1145 }
0x1325   : > { %v1148_v63 = vmul.f32 %v1861_v51, %v1146_v62 }
0x1327   : > { %v2468_v2 = vsel %vm1155_vm1, %v1148_v63, %v1034_v37  ;;  %v1158_v13 = vsel %vm1155_vm1, %v1148_v63, 0.0 }
0x1328   : > { %1172 = vrot.lane.b32.xlu1 %v2468_v2, %s2031_s23 }
0x139a   : > { %v1173_v3 = vpop.permute.xlu1 %1172 }
0x139b   : > { %1677 = vmatmul.mubr.msk.f32.vlgmr.msra.gmra.mrb[6].mxu1 %vm309_vm2, %v1173_v3 }
0x146e   : > { %v1242_v6 = vpop.f32.mrb[6].mxu1 }
0x146f   : > { %v1246_v8 = vadd.f32 %v1242_v6, %v1170_v4  ;;  %v1678_v10 = vpop.f32.mrb[7].mxu1 }
0x1471   : > { %1864 = vtanh.f32 %v1246_v8  ;;  %v1542_v30 = vmul.f32 -1.442695, %v1246_v8 }
0x1473   : > { %1866 = vpow2.f32 %v1542_v30 }
0x147b   : > { %v1865_v14 = vpop.eup %1864 }
0x147c   : > { %1256 = vrot.lane.b32.xlu0 %v1865_v14, %s2629_s4 }
0x147d   : > { %v1867_v33 = vpop.eup %1866 }
0x147e   : > { %v1250_v5 = vadd.f32 1.0, %v1867_v33 }
0x1480   : > { %1275 = vperm.xlu0 %1807, %v1273_v15   ;;  %1868 = vrcp.f32 %v1250_v5 }
0x1484   : > { %426 = vrot.lane.b32.xlu0 %v424_v16, %s2031_s23 }
0x1488   : > { %672 = vrot.lane.b32.xlu0 %v670_v17, %s2031_s23 }
0x148a   : > { %v1869_v18 = vpop.eup %1868 }
0x148b   : > { %v1254_v1 = vmul.f32 %v1869_v18, %v1157_v11 }
0x148c   : > { %916 = vrot.lane.b32.xlu0 %v914_v19, %s2031_s23 }
0x1490   : > { %1160 = vrot.lane.b32.xlu0 %v1158_v13, %s2031_s23 }
0x14ee   : > { %v1257_v21 = vpop.permute.xlu0 %1256 }
0x14ef   : > { %v1259_v20 = vmul.f32 %v1869_v18, %v1257_v21 }
0x14f1   : > { %1261 = vrot.lane.b32.xlu1 %v1259_v20, %s2629_s4 }
0x14ff   : > { %v1276_v0 = vpop.permute.xlu0 %1275 }
0x1500   : > { %vm1277_vm2 = vcmp.eq.s32.totalorder %v1276_v0, 1 }
0x1503   : > { %v427_v9 = vpop.permute.xlu0 %426 }
0x1504   : > { %431 = vst.msk [vmem:[%s429_s6] sm:$0x3] %vm288_vm0, %v427_v9  ;;  %s2642_s6 = sshll.u32 %s2396_s22, 1  ;;  %s1318_s22 = sshll.u32 %s2502_s19, 4  ;;  %s2554_s22 = int_to_ptr.vmem [resolvable:$true] %s1318_s22 }
0x1505   : > { %s919_s7 = scalar_lea.vmem %s2502_s19, %s2642_s6 [#allocation9]  ;;  %s1936_s6 = sshll.u32 %s2033_s29, 4  ;;  %s1937_s6 = int_to_ptr.vmem [resolvable:$false] %s1936_s6 }
0x1506   : > { %p1939_p7 = scmp.lt.s32.totalorder %s2554_s22, %s1937_s6 }
0x1507   : > { %v673_v56 = vpop.permute.xlu0 %672 }
0x150b   : > { %v917_v31 = vpop.permute.xlu0 %916 }
0x150f   : > { %v1161_v35 = vpop.permute.xlu0 %1160 }
0x1563   : > { %v1262_v7 = vpop.permute.xlu1 %1261 }
0x1564   : > { %v1264_v22 = vadd.f32 %v1262_v7, %v1254_v1 }
0x1566   : > { %1870 = vtanh.f32 %v1264_v22  ;;  %v1279_v23 = vsel %vm1277_vm2, %v1264_v22, %v1157_v11 }
0x1570   : > { %v1871_v24 = vpop.eup %1870 }
0x1571   : > { %1267 = vrot.lane.b32.xlu1 %v1871_v24, %s2629_s4 }
0x1575   : > { %550 = vrot.lane.b32.xlu1 %v548_v25, %s2031_s23 }
0x1579   : > { %794 = vrot.lane.b32.xlu1 %v792_v26, %s2031_s23 }
0x157d   : > { %1038 = vrot.lane.b32.xlu1 %v1036_v27, %s2031_s23 }
0x15e3   : > { %v1268_v54 = vpop.permute.xlu1 %1267 }
0x15e4   : > { %v1270_v28 = vmul.f32 %v1869_v18, %v1268_v54 }
0x15e6   : > { %v1280_v44 = vsel %vm1277_vm2, %v1270_v28, 0.0  ;;  %v1278_v46 = vsel %vm1277_vm2, %v1270_v28, %v2468_v2 }
0x15e7   : > { %1282 = vrot.lane.b32.xlu1 %v1280_v44, %s2031_s23  ;;  %1288 = vrot.lane.b32.xlu0 %v1278_v46, %s2031_s23  ;;  %v551_v29 = vpop.permute.xlu1 %550  ;;  %s2643_s23 = sshll.u32 %s2427_s18, 1  ;;  %s1285_s18 = scalar_lea.vmem %s2502_s19, %s1540_s9 [#allocation9] }
0x15e8   : > { %554 = vst.msk [vmem:[%s553_s8] sm:$0x3] %vm288_vm0, %v551_v29  ;;  %s1041_s4 = scalar_lea.vmem %s2502_s19, %s2643_s23 [#allocation9]  ;;  %s1163_s8 = scalar_lea.vmem %s2502_s19, %s2644_s30 [#allocation9] }
0x15e9   : > { %676 = vst.msk [vmem:[%s675_s24] sm:$0x3] %vm288_vm0, %v673_v56  ;;  %s1550_s24 = sshll.u32 %s2010_s15, 8  ;;  %s1932_s15 = scalar_lea.vmem %s2554_s22, 256 }
0x15ea   : > { %s2562_s28 = scalar_lea.hbm %s2619_s3, %s1550_s24  ;;  %p1933_p0 = scmp.ne.s32.totalorder %s2554_s22, %s1932_s15 }
0x15eb   : > { %1293 = vrot.lane.b32.xlu1 %v1279_v23, %s2032_s11  ;;  %v795_v32 = vpop.permute.xlu1 %794  ;;  %s1938_s9 = scalar_lea.vmem %s1937_s6, 512 }
0x15ec   : > { %798 = vst.msk [vmem:[%s797_s21] sm:$0x3] %vm288_vm0, %v795_v32  ;;  %p1934_p11 = pnand %p1933_p0, %p2645_p3  ;;  %p1940_p10 = scmp.lt.s32.totalorder %s1938_s9, %s1932_s15 }
0x15ed   : > { %920 = vst.msk [vmem:[%s919_s7] sm:$0x3] %vm288_vm0, %v917_v31 }
0x15ee   : > { %p1935_p13 = pneg %p1934_p11  ;;  %p1941_p12 = por %p1940_p10, %p1939_p7 }
0x15ef   : > { %v1039_v34 = vpop.permute.xlu1 %1038 }
0x15f0   : > { %1042 = vst.msk [vmem:[%s1041_s4] sm:$0x3] %vm288_vm0, %v1039_v34  ;;  %s1298_s4 = scalar_lea.sflag [#allocation6], %s2211_s5  ;;  %p1942_p9 = pnand %p1941_p12, %p1935_p13 }
0x15f1   : > { %1164 = vst.msk [vmem:[%s1163_s8] sm:$0x3] %vm288_vm0, %v1161_v35 }
0x1659   : > { %v1289_v36 = vpop.permute.xlu0 %1288  ;;  %v1283_v37 = vpop.permute.xlu1 %1282 }
0x165a   : > { %1291 = vst.msk [vmem:[#allocation2] sm:$0x3] %vm288_vm0, %v1289_v36  ;;  %1286 = vst.msk [vmem:[%s1285_s18] sm:$0x3] %vm288_vm0, %v1283_v37 }
0x165b   : > { %1945 = shalt.err (!%p1942_p9)
}
0x165c   : > { %s1946_s19 = scalar_lea.hbm %s2562_s28, 256  ;;  %s1950_s23 = scalar_lea.hbm %s2619_s3, 512 }
0x165d   : > { %p1947_p1 = scmp.ne.s32.totalorder %s2562_s28, %s1946_s19  ;;  %p1951_p5 = scmp.lt.u32.totalorder %s2562_s28, %s2619_s3 }
0x165e   : > { %p1952_p4 = scmp.lt.u32.totalorder %s1950_s23, %s1946_s19  ;;  %p1954_p0 = scmp.lt.u32.totalorder %s1946_s19, %s2562_s28 }
0x165f   : > { %p1948_p6 = pnand %p1947_p1, %p2645_p3 }
0x1660   : > { %p1953_p8 = por %p1952_p4, %p1951_p5 }
0x1661   : > { %p1949_p2 = pneg %p1948_p6 }
0x1662   : > { %p1955_p11 = por %p1954_p0, %p1953_p8 }
0x1664   : > { %p1956_p13 = pnand %p1955_p11, %p1949_p2 }
0x1666   : > { %1959 = shalt.err (!%p1956_p13)
}
0x1667   : > { %s2034_s24 = smov 2   ;;  %s2646_s18 = smov 32   ;;  %v1294_v38 = vpop.permute.xlu1 %1293 }
0x1668   : > { %1731 = dma.vmem_to_hbm [thread:$0]  (%p2645_p3), %s2554_s22, 256, %s2562_s28, %s1298_s4, %s2646_s18, %s2646_s18, %s2034_s24   ;;  %1296 = vst.msk [vmem:[#allocation3] sm:$0x3] %vm288_vm0, %v1294_v38 }
0x1669 PF: > { %s1333_s10 = sand.u32 1, %s1998_s12   ;;  %p2647_p7 = scmp.ne.s32.totalorder %s2633_s27, 0 }
0x166a   : > { %p2648_p10 = scmp.ge.s32.totalorder %s2018_s17, 2  ;;  %s1334_s21 = scalar_lea.sflag [#allocation6], %s1333_s10 }
0x166c   : > { %p1741_p12 = pnand %p2648_p10, %p2647_p7 }
0x166e   : > { %1993 = dma.done.wait (!%p1741_p12), %s1334_s21, 256  }
0x166f   : > { %1995 = vsyncadd (!%p1741_p12), %s1334_s21, 4294967040  ;;  %s22_s17 = sadd.s32 1, %s2018_s17   ;;  %s2649_s12 = smov %s2002_s13 }
0x1670   : > { %p19_p9 = scmp.ge.s32.totalorder %s22_s17, 4   ;;  %s2650_s13 = smov %s2006_s14 }
0x1671   : > { %s2651_s14 = smov %s2111_s26  ;;  %s2652_s15 = smov %s2014_s16 }
0x1672   : > { %s2653_s16 = smov %s2655_s20  ;;  %21 = sbr.rel (!%p19_p9) target bundleno = 8 (0x8), region = 110 }
0x1679   :  { %1339 = vsyncpa [#allocation5], 1 }
0x167a   :  { %1341 = vsyncpa [#allocation5 + $0x1], 1 }
0x167b   :  { %1342 = vsyncpa [#allocation8], 1 }
0x167c   :  { %1344 = vsyncpa [#allocation8 + $0x1], 1 }
0x167d   :  { %1345 = vsyncpa [#allocation6], 1 }
0x167e   :  { %1347 = vsyncpa [#allocation6 + $0x1], 1 }

</bundles_post_ra>
